<compile_context>
chip_gen: v7x
topology: tpu7x:2x2x1
jax: 0.10.0
libtpu: 0.0.40
codegen_flags: <defaults>
</compile_context>

<pallas_src>
import jax
import jax.numpy as jnp
from jax.experimental import pallas as pl
from jax.experimental.pallas import tpu as pltpu

LANE = 128   # lane padding per gate (one vreg width)
BP = 8       # sublane-padded batch rows


def sentiment_kernel(tok_ref,     # (B, S)        int32, SMEM
                     emb_ref,     # (V, E)        f32,   VMEM
                     w_i_ref,     # (E, 3*LANE)   fused + lane-padded input weights (r|z|n)
                     w_h_ref,     # (LANE, 3*LANE) fused + padded hidden weights
                     b_i_ref,     # (1, 3*LANE)   [b_ir+b_hr | b_iz+b_hz | b_in]
                     b_h_ref,     # (1, 3*LANE)   [0 | 0 | b_hn]
                     w_fc_ref,    # (LANE, O)     padded FC weights
                     b_fc_ref,    # (1, O)
                     out_ref,     # (B, O)
                     x_ref):      # (S*BP, E)     VMEM scratch, time-major slab
    B, S = tok_ref.shape
    SBp, E = x_ref.shape
    Bp = SBp // S
    HP = w_h_ref.shape[0]            # = LANE (padded hidden width)

    # ---- 1) In-kernel embedding gather into a time-major, sublane-padded slab.
    x_ref[...] = jnp.zeros_like(x_ref)          # keep padded batch rows finite
    for t in range(S):
        for b in range(B):
            tok = tok_ref[b, t]                                   # SMEM scalar
            x_ref[pl.ds(t * Bp + b, 1), :] = emb_ref[pl.ds(tok, 1), :]

    # ---- 2) Hoisted input projection for the whole sequence (one MXU matmul),
    #         r/z/n input biases (and the h-independent b_hr/b_hz) folded in.
    gi_all = (jnp.dot(x_ref[...], w_i_ref[...],
                      preferred_element_type=jnp.float32)
              + b_i_ref[...])                                     # (S*Bp, 3*HP)

    # ---- 3) Fully unrolled recurrence: only the h-dependent matmul + gate
    #         math sits on the serial critical path.  All gate slices are at
    #         128-lane vreg boundaries; batch slices at sublane boundaries.
    w_h = w_h_ref[...]
    b_h = b_h_ref[...]
    h = jnp.zeros((Bp, HP), dtype=jnp.float32)
    for t in range(S):
        gi = gi_all[t * Bp:(t + 1) * Bp, :]                       # (Bp, 3*HP)
        gh = jnp.dot(h, w_h, preferred_element_type=jnp.float32) + b_h
        rz = jax.nn.sigmoid(gi[:, :2 * HP] + gh[:, :2 * HP])      # fused r|z sigmoid
        r = rz[:, :HP]
        z = rz[:, HP:]
        n = jnp.tanh(gi[:, 2 * HP:] + r * gh[:, 2 * HP:])
        h = (1.0 - z) * n + z * h
        # Padded lanes stay exactly 0 (zero weight cols + zero bias -> gi=gh=0,
        # n=0, h=0); padded batch rows are independent and never stored.

    # ---- 4) Final Linear on the last hidden state.
    logits = (jnp.dot(h, w_fc_ref[...], preferred_element_type=jnp.float32)
              + b_fc_ref[...])                                    # (Bp, O)
    out_ref[...] = logits[:B, :]


def prepare_params(params):
    """One-time weight prep (fuse gates r|z|n, transpose, lane-pad each gate to
    LANE columns, fold h-independent biases).  Cache this per model — the
    per-call path in sentiment_forward does no tensor work outside the
    pallas_call."""
    emb = params["embedding"].astype(jnp.float32)             # (V, E)
    w_ih, w_hh = params["w_ih"], params["w_hh"]               # (3H, E), (3H, H)
    b_ih = params["b_ih"].astype(jnp.float32)
    b_hh = params["b_hh"].astype(jnp.float32)
    w_fc, b_fc = params["fc_w"], params["fc_b"]               # (O, H), (O,)

    H = w_hh.shape[1]
    E = w_ih.shape[1]
    O = w_fc.shape[0]
    assert H <= LANE, "lane-padding scheme assumes hidden_dim <= 128"

    def fuse_pad(w, rows):
        # (3H, D) -> (rows, 3*LANE); gate g lives at lanes [g*LANE, g*LANE+H)
        D = w.shape[1]
        out = jnp.zeros((rows, 3 * LANE), jnp.float32)
        for g in range(3):
            blk = w[g * H:(g + 1) * H, :].T.astype(jnp.float32)   # (D, H)
            out = out.at[:D, g * LANE:g * LANE + H].set(blk)
        return out

    w_i = fuse_pad(w_ih, E)        # (E, 3*LANE)
    w_h = fuse_pad(w_hh, LANE)     # (LANE, 3*LANE); rows H..LANE-1 are zero

    b_i = jnp.zeros((1, 3 * LANE), jnp.float32)
    b_i = b_i.at[0, 0:H].set(b_ih[0:H] + b_hh[0:H])                     # r
    b_i = b_i.at[0, LANE:LANE + H].set(b_ih[H:2 * H] + b_hh[H:2 * H])   # z
    b_i = b_i.at[0, 2 * LANE:2 * LANE + H].set(b_ih[2 * H:3 * H])       # n (input part)
    b_h = jnp.zeros((1, 3 * LANE), jnp.float32)
    b_h = b_h.at[0, 2 * LANE:2 * LANE + H].set(b_hh[2 * H:3 * H])       # b_hn (inside r*(...))

    w_fc_p = jnp.zeros((LANE, O), jnp.float32).at[:H, :].set(
        w_fc.T.astype(jnp.float32))
    b_fc_p = b_fc.reshape(1, O).astype(jnp.float32)

    return {"emb": emb, "w_i": w_i, "w_h": w_h, "b_i": b_i, "b_h": b_h,
            "w_fc": w_fc_p, "b_fc": b_fc_p}


def sentiment_forward(tokens, prepped):
    """Per-call path: exactly one pallas_call, no wrapper tensor ops."""
    B, S = tokens.shape
    E = prepped["emb"].shape[1]
    O = prepped["w_fc"].shape[1]

    smem = pl.BlockSpec(memory_space=pltpu.MemorySpace.SMEM)
    vmem = pl.BlockSpec(memory_space=pltpu.MemorySpace.VMEM)

    return pl.pallas_call(
        sentiment_kernel,
        out_shape=jax.ShapeDtypeStruct((B, O), jnp.float32),
        in_specs=[smem, vmem, vmem, vmem, vmem, vmem, vmem, vmem],
        out_specs=vmem,
        scratch_shapes=[pltpu.VMEM((S * BP, E), jnp.float32)],
        # Single block: the whole working set is a few hundred KiB and fits
        # VMEM on every generation.  Scale-up plan (not needed at toy sizes):
        #  - add a batch grid axis with dimension_semantics=("parallel",) so
        #    v7x's two TensorCores are used,
        #  - chunk gi_all over time blocks (pltpu.emit_pipeline) to stay under
        #    v7x's 64 MiB VMEM as S*B grows.
    )(tokens, prepped["emb"], prepped["w_i"], prepped["w_h"],
      prepped["b_i"], prepped["b_h"], prepped["w_fc"], prepped["b_fc"])


def reference_forward(tokens, params):
    """Pure-JAX replica of the PyTorch forward for a correctness check."""
    emb_table = params["embedding"]
    w_ih, w_hh = params["w_ih"], params["w_hh"]
    b_ih, b_hh = params["b_ih"], params["b_hh"]
    w_fc, b_fc = params["fc_w"], params["fc_b"]

    B, S = tokens.shape
    H = w_hh.shape[1]
    emb = jnp.take(emb_table, tokens, axis=0)   # (B, S, E)
    h = jnp.zeros((B, H), dtype=jnp.float32)
    for t in range(S):
        x_t = emb[:, t, :]
        gi = x_t @ w_ih.T + b_ih
        gh = h @ w_hh.T + b_hh
        r = jax.nn.sigmoid(gi[:, :H] + gh[:, :H])
        z = jax.nn.sigmoid(gi[:, H:2 * H] + gh[:, H:2 * H])
        n = jnp.tanh(gi[:, 2 * H:] + r * gh[:, 2 * H:])
        h = (1.0 - z) * n + z * h
    return h @ w_fc.T + b_fc


def init_params(key, vocab_size, embed_dim, hidden_dim, output_dim):
    ks = jax.random.split(key, 7)
    k = 1.0 / jnp.sqrt(hidden_dim)
    u = lambda kk, shape, bound: jax.random.uniform(
        kk, shape, jnp.float32, -bound, bound)
    return {
        "embedding": jax.random.normal(ks[0], (vocab_size, embed_dim),
                                       jnp.float32),
        "w_ih": u(ks[1], (3 * hidden_dim, embed_dim), k),
        "w_hh": u(ks[2], (3 * hidden_dim, hidden_dim), k),
        "b_ih": u(ks[3], (3 * hidden_dim,), k),
        "b_hh": u(ks[4], (3 * hidden_dim,), k),
        "fc_w": u(ks[5], (output_dim, hidden_dim), k),
        "fc_b": u(ks[6], (output_dim,), k),
    }


if __name__ == "__main__":
    vocab_size, embed_dim, hidden_dim, output_dim = 50, 16, 32, 4
    batch, seq = 2, 8

    key = jax.random.PRNGKey(0)
    pkey, tkey = jax.random.split(key)
    params = init_params(pkey, vocab_size, embed_dim, hidden_dim, output_dim)
    tokens = jax.random.randint(tkey, (batch, seq), 0, vocab_size,
                                dtype=jnp.int32)

    prepped = prepare_params(params)        # one-time prep (cache per model)
    out = sentiment_forward(tokens, prepped)
    out = jax.block_until_ready(out)

    ref = reference_forward(tokens, params)
    assert out.shape == (batch, output_dim)
    assert jnp.allclose(out, ref, rtol=1e-4, atol=1e-4)

    print("KERNEL_OK")
</pallas_src>

<mosaic_0001>
module attributes {stable_mosaic.version = 11 : i64} {
  func.func @sentiment_kernel(%arg0: memref<2x8xi32, #tpu.memory_space<smem>>, %arg1: memref<50x16xf32, #tpu.memory_space<vmem>>, %arg2: memref<16x384xf32, #tpu.memory_space<vmem>>, %arg3: memref<128x384xf32, #tpu.memory_space<vmem>>, %arg4: memref<1x384xf32, #tpu.memory_space<vmem>>, %arg5: memref<1x384xf32, #tpu.memory_space<vmem>>, %arg6: memref<128x4xf32, #tpu.memory_space<vmem>>, %arg7: memref<1x4xf32, #tpu.memory_space<vmem>>, %arg8: memref<2x4xf32, #tpu.memory_space<vmem>>, %arg9: memref<64x16xf32, #tpu.memory_space<vmem>>) attributes {dimension_semantics = [], scalar_prefetch = 0 : i64, scratch_operands = 1 : i64, tpu.core_type = #tpu.core_type<tc>} {
    %cst = arith.constant 0.000000e+00 : f32
    %0 = vector.broadcast %cst : f32 to vector<64x16xf32>
    %c0 = arith.constant 0 : index
    %c0_0 = arith.constant 0 : index
    %1 = vector.load %arg9[%c0, %c0_0] : memref<64x16xf32, #tpu.memory_space<vmem>>, vector<64x16xf32>
    tpu.vector_store %arg9[%c0, %c0_0], %0 {strides = array<i32>} : memref<64x16xf32, #tpu.memory_space<vmem>>, vector<64x16xf32>,
    %c0_1 = arith.constant 0 : index
    %c0_2 = arith.constant 0 : index
    %2 = memref.load %arg0[%c0_1, %c0_2] : memref<2x8xi32, #tpu.memory_space<smem>>
    %3 = arith.index_cast %2 : i32 to index
    %c0_3 = arith.constant 0 : index
    %4 = vector.load %arg1[%3, %c0_3] : memref<50x16xf32, #tpu.memory_space<vmem>>, vector<1x16xf32>
    %c0_4 = arith.constant 0 : index
    %c0_5 = arith.constant 0 : index
    %5 = vector.load %arg9[%c0_4, %c0_5] : memref<64x16xf32, #tpu.memory_space<vmem>>, vector<1x16xf32>
    tpu.vector_store %arg9[%c0_4, %c0_5], %4 {strides = array<i32>} : memref<64x16xf32, #tpu.memory_space<vmem>>, vector<1x16xf32>,
    %c1 = arith.constant 1 : index
    %c0_6 = arith.constant 0 : index
    %6 = memref.load %arg0[%c1, %c0_6] : memref<2x8xi32, #tpu.memory_space<smem>>
    %7 = arith.index_cast %6 : i32 to index
    %c0_7 = arith.constant 0 : index
    %8 = vector.load %arg1[%7, %c0_7] : memref<50x16xf32, #tpu.memory_space<vmem>>, vector<1x16xf32>
    %c1_8 = arith.constant 1 : index
    %c0_9 = arith.constant 0 : index
    %9 = vector.load %arg9[%c1_8, %c0_9] : memref<64x16xf32, #tpu.memory_space<vmem>>, vector<1x16xf32>
    tpu.vector_store %arg9[%c1_8, %c0_9], %8 {strides = array<i32>} : memref<64x16xf32, #tpu.memory_space<vmem>>, vector<1x16xf32>,
    %c0_10 = arith.constant 0 : index
    %c1_11 = arith.constant 1 : index
    %10 = memref.load %arg0[%c0_10, %c1_11] : memref<2x8xi32, #tpu.memory_space<smem>>
    %11 = arith.index_cast %10 : i32 to index
    %c0_12 = arith.constant 0 : index
    %12 = vector.load %arg1[%11, %c0_12] : memref<50x16xf32, #tpu.memory_space<vmem>>, vector<1x16xf32>
    %c8 = arith.constant 8 : index
    %c0_13 = arith.constant 0 : index
    %13 = vector.load %arg9[%c8, %c0_13] : memref<64x16xf32, #tpu.memory_space<vmem>>, vector<1x16xf32>
    tpu.vector_store %arg9[%c8, %c0_13], %12 {strides = array<i32>} : memref<64x16xf32, #tpu.memory_space<vmem>>, vector<1x16xf32>,
    %c1_14 = arith.constant 1 : index
    %c1_15 = arith.constant 1 : index
    %14 = memref.load %arg0[%c1_14, %c1_15] : memref<2x8xi32, #tpu.memory_space<smem>>
    %15 = arith.index_cast %14 : i32 to index
    %c0_16 = arith.constant 0 : index
    %16 = vector.load %arg1[%15, %c0_16] : memref<50x16xf32, #tpu.memory_space<vmem>>, vector<1x16xf32>
    %c9 = arith.constant 9 : index
    %c0_17 = arith.constant 0 : index
    %17 = vector.load %arg9[%c9, %c0_17] : memref<64x16xf32, #tpu.memory_space<vmem>>, vector<1x16xf32>
    tpu.vector_store %arg9[%c9, %c0_17], %16 {strides = array<i32>} : memref<64x16xf32, #tpu.memory_space<vmem>>, vector<1x16xf32>,
    %c0_18 = arith.constant 0 : index
    %c2 = arith.constant 2 : index
    %18 = memref.load %arg0[%c0_18, %c2] : memref<2x8xi32, #tpu.memory_space<smem>>
    %19 = arith.index_cast %18 : i32 to index
    %c0_19 = arith.constant 0 : index
    %20 = vector.load %arg1[%19, %c0_19] : memref<50x16xf32, #tpu.memory_space<vmem>>, vector<1x16xf32>
    %c16 = arith.constant 16 : index
    %c0_20 = arith.constant 0 : index
    %21 = vector.load %arg9[%c16, %c0_20] : memref<64x16xf32, #tpu.memory_space<vmem>>, vector<1x16xf32>
    tpu.vector_store %arg9[%c16, %c0_20], %20 {strides = array<i32>} : memref<64x16xf32, #tpu.memory_space<vmem>>, vector<1x16xf32>,
    %c1_21 = arith.constant 1 : index
    %c2_22 = arith.constant 2 : index
    %22 = memref.load %arg0[%c1_21, %c2_22] : memref<2x8xi32, #tpu.memory_space<smem>>
    %23 = arith.index_cast %22 : i32 to index
    %c0_23 = arith.constant 0 : index
    %24 = vector.load %arg1[%23, %c0_23] : memref<50x16xf32, #tpu.memory_space<vmem>>, vector<1x16xf32>
    %c17 = arith.constant 17 : index
    %c0_24 = arith.constant 0 : index
    %25 = vector.load %arg9[%c17, %c0_24] : memref<64x16xf32, #tpu.memory_space<vmem>>, vector<1x16xf32>
    tpu.vector_store %arg9[%c17, %c0_24], %24 {strides = array<i32>} : memref<64x16xf32, #tpu.memory_space<vmem>>, vector<1x16xf32>,
    %c0_25 = arith.constant 0 : index
    %c3 = arith.constant 3 : index
    %26 = memref.load %arg0[%c0_25, %c3] : memref<2x8xi32, #tpu.memory_space<smem>>
    %27 = arith.index_cast %26 : i32 to index
    %c0_26 = arith.constant 0 : index
    %28 = vector.load %arg1[%27, %c0_26] : memref<50x16xf32, #tpu.memory_space<vmem>>, vector<1x16xf32>
    %c24 = arith.constant 24 : index
    %c0_27 = arith.constant 0 : index
    %29 = vector.load %arg9[%c24, %c0_27] : memref<64x16xf32, #tpu.memory_space<vmem>>, vector<1x16xf32>
    tpu.vector_store %arg9[%c24, %c0_27], %28 {strides = array<i32>} : memref<64x16xf32, #tpu.memory_space<vmem>>, vector<1x16xf32>,
    %c1_28 = arith.constant 1 : index
    %c3_29 = arith.constant 3 : index
    %30 = memref.load %arg0[%c1_28, %c3_29] : memref<2x8xi32, #tpu.memory_space<smem>>
    %31 = arith.index_cast %30 : i32 to index
    %c0_30 = arith.constant 0 : index
    %32 = vector.load %arg1[%31, %c0_30] : memref<50x16xf32, #tpu.memory_space<vmem>>, vector<1x16xf32>
    %c25 = arith.constant 25 : index
    %c0_31 = arith.constant 0 : index
    %33 = vector.load %arg9[%c25, %c0_31] : memref<64x16xf32, #tpu.memory_space<vmem>>, vector<1x16xf32>
    tpu.vector_store %arg9[%c25, %c0_31], %32 {strides = array<i32>} : memref<64x16xf32, #tpu.memory_space<vmem>>, vector<1x16xf32>,
    %c0_32 = arith.constant 0 : index
    %c4 = arith.constant 4 : index
    %34 = memref.load %arg0[%c0_32, %c4] : memref<2x8xi32, #tpu.memory_space<smem>>
    %35 = arith.index_cast %34 : i32 to index
    %c0_33 = arith.constant 0 : index
    %36 = vector.load %arg1[%35, %c0_33] : memref<50x16xf32, #tpu.memory_space<vmem>>, vector<1x16xf32>
    %c32 = arith.constant 32 : index
    %c0_34 = arith.constant 0 : index
    %37 = vector.load %arg9[%c32, %c0_34] : memref<64x16xf32, #tpu.memory_space<vmem>>, vector<1x16xf32>
    tpu.vector_store %arg9[%c32, %c0_34], %36 {strides = array<i32>} : memref<64x16xf32, #tpu.memory_space<vmem>>, vector<1x16xf32>,
    %c1_35 = arith.constant 1 : index
    %c4_36 = arith.constant 4 : index
    %38 = memref.load %arg0[%c1_35, %c4_36] : memref<2x8xi32, #tpu.memory_space<smem>>
    %39 = arith.index_cast %38 : i32 to index
    %c0_37 = arith.constant 0 : index
    %40 = vector.load %arg1[%39, %c0_37] : memref<50x16xf32, #tpu.memory_space<vmem>>, vector<1x16xf32>
    %c33 = arith.constant 33 : index
    %c0_38 = arith.constant 0 : index
    %41 = vector.load %arg9[%c33, %c0_38] : memref<64x16xf32, #tpu.memory_space<vmem>>, vector<1x16xf32>
    tpu.vector_store %arg9[%c33, %c0_38], %40 {strides = array<i32>} : memref<64x16xf32, #tpu.memory_space<vmem>>, vector<1x16xf32>,
    %c0_39 = arith.constant 0 : index
    %c5 = arith.constant 5 : index
    %42 = memref.load %arg0[%c0_39, %c5] : memref<2x8xi32, #tpu.memory_space<smem>>
    %43 = arith.index_cast %42 : i32 to index
    %c0_40 = arith.constant 0 : index
    %44 = vector.load %arg1[%43, %c0_40] : memref<50x16xf32, #tpu.memory_space<vmem>>, vector<1x16xf32>
    %c40 = arith.constant 40 : index
    %c0_41 = arith.constant 0 : index
    %45 = vector.load %arg9[%c40, %c0_41] : memref<64x16xf32, #tpu.memory_space<vmem>>, vector<1x16xf32>
    tpu.vector_store %arg9[%c40, %c0_41], %44 {strides = array<i32>} : memref<64x16xf32, #tpu.memory_space<vmem>>, vector<1x16xf32>,
    %c1_42 = arith.constant 1 : index
    %c5_43 = arith.constant 5 : index
    %46 = memref.load %arg0[%c1_42, %c5_43] : memref<2x8xi32, #tpu.memory_space<smem>>
    %47 = arith.index_cast %46 : i32 to index
    %c0_44 = arith.constant 0 : index
    %48 = vector.load %arg1[%47, %c0_44] : memref<50x16xf32, #tpu.memory_space<vmem>>, vector<1x16xf32>
    %c41 = arith.constant 41 : index
    %c0_45 = arith.constant 0 : index
    %49 = vector.load %arg9[%c41, %c0_45] : memref<64x16xf32, #tpu.memory_space<vmem>>, vector<1x16xf32>
    tpu.vector_store %arg9[%c41, %c0_45], %48 {strides = array<i32>} : memref<64x16xf32, #tpu.memory_space<vmem>>, vector<1x16xf32>,
    %c0_46 = arith.constant 0 : index
    %c6 = arith.constant 6 : index
    %50 = memref.load %arg0[%c0_46, %c6] : memref<2x8xi32, #tpu.memory_space<smem>>
    %51 = arith.index_cast %50 : i32 to index
    %c0_47 = arith.constant 0 : index
    %52 = vector.load %arg1[%51, %c0_47] : memref<50x16xf32, #tpu.memory_space<vmem>>, vector<1x16xf32>
    %c48 = arith.constant 48 : index
    %c0_48 = arith.constant 0 : index
    %53 = vector.load %arg9[%c48, %c0_48] : memref<64x16xf32, #tpu.memory_space<vmem>>, vector<1x16xf32>
    tpu.vector_store %arg9[%c48, %c0_48], %52 {strides = array<i32>} : memref<64x16xf32, #tpu.memory_space<vmem>>, vector<1x16xf32>,
    %c1_49 = arith.constant 1 : index
    %c6_50 = arith.constant 6 : index
    %54 = memref.load %arg0[%c1_49, %c6_50] : memref<2x8xi32, #tpu.memory_space<smem>>
    %55 = arith.index_cast %54 : i32 to index
    %c0_51 = arith.constant 0 : index
    %56 = vector.load %arg1[%55, %c0_51] : memref<50x16xf32, #tpu.memory_space<vmem>>, vector<1x16xf32>
    %c49 = arith.constant 49 : index
    %c0_52 = arith.constant 0 : index
    %57 = vector.load %arg9[%c49, %c0_52] : memref<64x16xf32, #tpu.memory_space<vmem>>, vector<1x16xf32>
    tpu.vector_store %arg9[%c49, %c0_52], %56 {strides = array<i32>} : memref<64x16xf32, #tpu.memory_space<vmem>>, vector<1x16xf32>,
    %c0_53 = arith.constant 0 : index
    %c7 = arith.constant 7 : index
    %58 = memref.load %arg0[%c0_53, %c7] : memref<2x8xi32, #tpu.memory_space<smem>>
    %59 = arith.index_cast %58 : i32 to index
    %c0_54 = arith.constant 0 : index
    %60 = vector.load %arg1[%59, %c0_54] : memref<50x16xf32, #tpu.memory_space<vmem>>, vector<1x16xf32>
    %c56 = arith.constant 56 : index
    %c0_55 = arith.constant 0 : index
    %61 = vector.load %arg9[%c56, %c0_55] : memref<64x16xf32, #tpu.memory_space<vmem>>, vector<1x16xf32>
    tpu.vector_store %arg9[%c56, %c0_55], %60 {strides = array<i32>} : memref<64x16xf32, #tpu.memory_space<vmem>>, vector<1x16xf32>,
    %c1_56 = arith.constant 1 : index
    %c7_57 = arith.constant 7 : index
    %62 = memref.load %arg0[%c1_56, %c7_57] : memref<2x8xi32, #tpu.memory_space<smem>>
    %63 = arith.index_cast %62 : i32 to index
    %c0_58 = arith.constant 0 : index
    %64 = vector.load %arg1[%63, %c0_58] : memref<50x16xf32, #tpu.memory_space<vmem>>, vector<1x16xf32>
    %c57 = arith.constant 57 : index
    %c0_59 = arith.constant 0 : index
    %65 = vector.load %arg9[%c57, %c0_59] : memref<64x16xf32, #tpu.memory_space<vmem>>, vector<1x16xf32>
    tpu.vector_store %arg9[%c57, %c0_59], %64 {strides = array<i32>} : memref<64x16xf32, #tpu.memory_space<vmem>>, vector<1x16xf32>,
    %c0_60 = arith.constant 0 : index
    %c0_61 = arith.constant 0 : index
    %66 = vector.load %arg9[%c0_60, %c0_61] : memref<64x16xf32, #tpu.memory_space<vmem>>, vector<64x16xf32>
    %c0_62 = arith.constant 0 : index
    %c0_63 = arith.constant 0 : index
    %67 = vector.load %arg2[%c0_62, %c0_63] : memref<16x384xf32, #tpu.memory_space<vmem>>, vector<16x384xf32>
    %cst_64 = arith.constant dense<0.000000e+00> : vector<64x384xf32>
    %68 = tpu.matmul %66, %67, %cst_64 {dimension_numbers = #tpu.dot_dimension_numbers<[1], [0], [0], [1], [0, 0, 1, 1], [], []>} : vector<64x16xf32>, vector<16x384xf32>, vector<64x384xf32> -> vector<64x384xf32>
    %c0_65 = arith.constant 0 : index
    %c0_66 = arith.constant 0 : index
    %69 = vector.load %arg4[%c0_65, %c0_66] : memref<1x384xf32, #tpu.memory_space<vmem>>, vector<1x384xf32>
    %70 = vector.broadcast %69 : vector<1x384xf32> to vector<64x384xf32>
    %71 = arith.addf %68, %70 : vector<64x384xf32>
    %c0_67 = arith.constant 0 : index
    %c0_68 = arith.constant 0 : index
    %72 = vector.load %arg3[%c0_67, %c0_68] : memref<128x384xf32, #tpu.memory_space<vmem>>, vector<128x384xf32>
    %c0_69 = arith.constant 0 : index
    %c0_70 = arith.constant 0 : index
    %73 = vector.load %arg5[%c0_69, %c0_70] : memref<1x384xf32, #tpu.memory_space<vmem>>, vector<1x384xf32>
    %cst_71 = arith.constant 0.000000e+00 : f32
    %74 = vector.broadcast %cst_71 : f32 to vector<8x128xf32>
    %75 = vector.extract_strided_slice %71 {offsets = [0, 0], sizes = [8, 384], strides = [1, 1]} : vector<64x384xf32> to vector<8x384xf32>
    %cst_72 = arith.constant dense<0.000000e+00> : vector<8x384xf32>
    %76 = tpu.matmul %74, %72, %cst_72 {dimension_numbers = #tpu.dot_dimension_numbers<[1], [0], [0], [1], [0, 0, 1, 1], [], []>} : vector<8x128xf32>, vector<128x384xf32>, vector<8x384xf32> -> vector<8x384xf32>
    %77 = vector.broadcast %73 : vector<1x384xf32> to vector<8x384xf32>
    %78 = arith.addf %76, %77 : vector<8x384xf32>
    %79 = vector.extract_strided_slice %75 {offsets = [0, 0], sizes = [8, 256], strides = [1, 1]} : vector<8x384xf32> to vector<8x256xf32>
    %80 = vector.extract_strided_slice %78 {offsets = [0, 0], sizes = [8, 256], strides = [1, 1]} : vector<8x384xf32> to vector<8x256xf32>
    %81 = arith.addf %79, %80 : vector<8x256xf32>
    %82 = arith.negf %81 : vector<8x256xf32>
    %83 = math.exp %82 : vector<8x256xf32>
    %cst_73 = arith.constant 1.000000e+00 : f32
    %84 = vector.broadcast %cst_73 : f32 to vector<8x256xf32>
    %85 = arith.addf %84, %83 : vector<8x256xf32>
    %86 = arith.divf %84, %85 : vector<8x256xf32>
    %87 = vector.extract_strided_slice %86 {offsets = [0, 0], sizes = [8, 128], strides = [1, 1]} : vector<8x256xf32> to vector<8x128xf32>
    %88 = vector.extract_strided_slice %86 {offsets = [0, 128], sizes = [8, 128], strides = [1, 1]} : vector<8x256xf32> to vector<8x128xf32>
    %89 = vector.extract_strided_slice %75 {offsets = [0, 256], sizes = [8, 128], strides = [1, 1]} : vector<8x384xf32> to vector<8x128xf32>
    %90 = vector.extract_strided_slice %78 {offsets = [0, 256], sizes = [8, 128], strides = [1, 1]} : vector<8x384xf32> to vector<8x128xf32>
    %91 = arith.mulf %87, %90 : vector<8x128xf32>
    %92 = arith.addf %89, %91 : vector<8x128xf32>
    %93 = math.tanh %92 : vector<8x128xf32>
    %cst_74 = arith.constant 1.000000e+00 : f32
    %94 = vector.broadcast %cst_74 : f32 to vector<8x128xf32>
    %95 = arith.subf %94, %88 : vector<8x128xf32>
    %96 = arith.mulf %95, %93 : vector<8x128xf32>
    %97 = arith.mulf %88, %74 : vector<8x128xf32>
    %98 = arith.addf %96, %97 : vector<8x128xf32>
    %99 = vector.extract_strided_slice %71 {offsets = [8, 0], sizes = [8, 384], strides = [1, 1]} : vector<64x384xf32> to vector<8x384xf32>
    %cst_75 = arith.constant dense<0.000000e+00> : vector<8x384xf32>
    %100 = tpu.matmul %98, %72, %cst_75 {dimension_numbers = #tpu.dot_dimension_numbers<[1], [0], [0], [1], [0, 0, 1, 1], [], []>} : vector<8x128xf32>, vector<128x384xf32>, vector<8x384xf32> -> vector<8x384xf32>
    %101 = vector.broadcast %73 : vector<1x384xf32> to vector<8x384xf32>
    %102 = arith.addf %100, %101 : vector<8x384xf32>
    %103 = vector.extract_strided_slice %99 {offsets = [0, 0], sizes = [8, 256], strides = [1, 1]} : vector<8x384xf32> to vector<8x256xf32>
    %104 = vector.extract_strided_slice %102 {offsets = [0, 0], sizes = [8, 256], strides = [1, 1]} : vector<8x384xf32> to vector<8x256xf32>
    %105 = arith.addf %103, %104 : vector<8x256xf32>
    %106 = arith.negf %105 : vector<8x256xf32>
    %107 = math.exp %106 : vector<8x256xf32>
    %cst_76 = arith.constant 1.000000e+00 : f32
    %108 = vector.broadcast %cst_76 : f32 to vector<8x256xf32>
    %109 = arith.addf %108, %107 : vector<8x256xf32>
    %110 = arith.divf %108, %109 : vector<8x256xf32>
    %111 = vector.extract_strided_slice %110 {offsets = [0, 0], sizes = [8, 128], strides = [1, 1]} : vector<8x256xf32> to vector<8x128xf32>
    %112 = vector.extract_strided_slice %110 {offsets = [0, 128], sizes = [8, 128], strides = [1, 1]} : vector<8x256xf32> to vector<8x128xf32>
    %113 = vector.extract_strided_slice %99 {offsets = [0, 256], sizes = [8, 128], strides = [1, 1]} : vector<8x384xf32> to vector<8x128xf32>
    %114 = vector.extract_strided_slice %102 {offsets = [0, 256], sizes = [8, 128], strides = [1, 1]} : vector<8x384xf32> to vector<8x128xf32>
    %115 = arith.mulf %111, %114 : vector<8x128xf32>
    %116 = arith.addf %113, %115 : vector<8x128xf32>
    %117 = math.tanh %116 : vector<8x128xf32>
    %cst_77 = arith.constant 1.000000e+00 : f32
    %118 = vector.broadcast %cst_77 : f32 to vector<8x128xf32>
    %119 = arith.subf %118, %112 : vector<8x128xf32>
    %120 = arith.mulf %119, %117 : vector<8x128xf32>
    %121 = arith.mulf %112, %98 : vector<8x128xf32>
    %122 = arith.addf %120, %121 : vector<8x128xf32>
    %123 = vector.extract_strided_slice %71 {offsets = [16, 0], sizes = [8, 384], strides = [1, 1]} : vector<64x384xf32> to vector<8x384xf32>
    %cst_78 = arith.constant dense<0.000000e+00> : vector<8x384xf32>
    %124 = tpu.matmul %122, %72, %cst_78 {dimension_numbers = #tpu.dot_dimension_numbers<[1], [0], [0], [1], [0, 0, 1, 1], [], []>} : vector<8x128xf32>, vector<128x384xf32>, vector<8x384xf32> -> vector<8x384xf32>
    %125 = vector.broadcast %73 : vector<1x384xf32> to vector<8x384xf32>
    %126 = arith.addf %124, %125 : vector<8x384xf32>
    %127 = vector.extract_strided_slice %123 {offsets = [0, 0], sizes = [8, 256], strides = [1, 1]} : vector<8x384xf32> to vector<8x256xf32>
    %128 = vector.extract_strided_slice %126 {offsets = [0, 0], sizes = [8, 256], strides = [1, 1]} : vector<8x384xf32> to vector<8x256xf32>
    %129 = arith.addf %127, %128 : vector<8x256xf32>
    %130 = arith.negf %129 : vector<8x256xf32>
    %131 = math.exp %130 : vector<8x256xf32>
    %cst_79 = arith.constant 1.000000e+00 : f32
    %132 = vector.broadcast %cst_79 : f32 to vector<8x256xf32>
    %133 = arith.addf %132, %131 : vector<8x256xf32>
    %134 = arith.divf %132, %133 : vector<8x256xf32>
    %135 = vector.extract_strided_slice %134 {offsets = [0, 0], sizes = [8, 128], strides = [1, 1]} : vector<8x256xf32> to vector<8x128xf32>
    %136 = vector.extract_strided_slice %134 {offsets = [0, 128], sizes = [8, 128], strides = [1, 1]} : vector<8x256xf32> to vector<8x128xf32>
    %137 = vector.extract_strided_slice %123 {offsets = [0, 256], sizes = [8, 128], strides = [1, 1]} : vector<8x384xf32> to vector<8x128xf32>
    %138 = vector.extract_strided_slice %126 {offsets = [0, 256], sizes = [8, 128], strides = [1, 1]} : vector<8x384xf32> to vector<8x128xf32>
    %139 = arith.mulf %135, %138 : vector<8x128xf32>
    %140 = arith.addf %137, %139 : vector<8x128xf32>
    %141 = math.tanh %140 : vector<8x128xf32>
    %cst_80 = arith.constant 1.000000e+00 : f32
    %142 = vector.broadcast %cst_80 : f32 to vector<8x128xf32>
    %143 = arith.subf %142, %136 : vector<8x128xf32>
    %144 = arith.mulf %143, %141 : vector<8x128xf32>
    %145 = arith.mulf %136, %122 : vector<8x128xf32>
    %146 = arith.addf %144, %145 : vector<8x128xf32>
    %147 = vector.extract_strided_slice %71 {offsets = [24, 0], sizes = [8, 384], strides = [1, 1]} : vector<64x384xf32> to vector<8x384xf32>
    %cst_81 = arith.constant dense<0.000000e+00> : vector<8x384xf32>
    %148 = tpu.matmul %146, %72, %cst_81 {dimension_numbers = #tpu.dot_dimension_numbers<[1], [0], [0], [1], [0, 0, 1, 1], [], []>} : vector<8x128xf32>, vector<128x384xf32>, vector<8x384xf32> -> vector<8x384xf32>
    %149 = vector.broadcast %73 : vector<1x384xf32> to vector<8x384xf32>
    %150 = arith.addf %148, %149 : vector<8x384xf32>
    %151 = vector.extract_strided_slice %147 {offsets = [0, 0], sizes = [8, 256], strides = [1, 1]} : vector<8x384xf32> to vector<8x256xf32>
    %152 = vector.extract_strided_slice %150 {offsets = [0, 0], sizes = [8, 256], strides = [1, 1]} : vector<8x384xf32> to vector<8x256xf32>
    %153 = arith.addf %151, %152 : vector<8x256xf32>
    %154 = arith.negf %153 : vector<8x256xf32>
    %155 = math.exp %154 : vector<8x256xf32>
    %cst_82 = arith.constant 1.000000e+00 : f32
    %156 = vector.broadcast %cst_82 : f32 to vector<8x256xf32>
    %157 = arith.addf %156, %155 : vector<8x256xf32>
    %158 = arith.divf %156, %157 : vector<8x256xf32>
    %159 = vector.extract_strided_slice %158 {offsets = [0, 0], sizes = [8, 128], strides = [1, 1]} : vector<8x256xf32> to vector<8x128xf32>
    %160 = vector.extract_strided_slice %158 {offsets = [0, 128], sizes = [8, 128], strides = [1, 1]} : vector<8x256xf32> to vector<8x128xf32>
    %161 = vector.extract_strided_slice %147 {offsets = [0, 256], sizes = [8, 128], strides = [1, 1]} : vector<8x384xf32> to vector<8x128xf32>
    %162 = vector.extract_strided_slice %150 {offsets = [0, 256], sizes = [8, 128], strides = [1, 1]} : vector<8x384xf32> to vector<8x128xf32>
    %163 = arith.mulf %159, %162 : vector<8x128xf32>
    %164 = arith.addf %161, %163 : vector<8x128xf32>
    %165 = math.tanh %164 : vector<8x128xf32>
    %cst_83 = arith.constant 1.000000e+00 : f32
    %166 = vector.broadcast %cst_83 : f32 to vector<8x128xf32>
    %167 = arith.subf %166, %160 : vector<8x128xf32>
    %168 = arith.mulf %167, %165 : vector<8x128xf32>
    %169 = arith.mulf %160, %146 : vector<8x128xf32>
    %170 = arith.addf %168, %169 : vector<8x128xf32>
    %171 = vector.extract_strided_slice %71 {offsets = [32, 0], sizes = [8, 384], strides = [1, 1]} : vector<64x384xf32> to vector<8x384xf32>
    %cst_84 = arith.constant dense<0.000000e+00> : vector<8x384xf32>
    %172 = tpu.matmul %170, %72, %cst_84 {dimension_numbers = #tpu.dot_dimension_numbers<[1], [0], [0], [1], [0, 0, 1, 1], [], []>} : vector<8x128xf32>, vector<128x384xf32>, vector<8x384xf32> -> vector<8x384xf32>
    %173 = vector.broadcast %73 : vector<1x384xf32> to vector<8x384xf32>
    %174 = arith.addf %172, %173 : vector<8x384xf32>
    %175 = vector.extract_strided_slice %171 {offsets = [0, 0], sizes = [8, 256], strides = [1, 1]} : vector<8x384xf32> to vector<8x256xf32>
    %176 = vector.extract_strided_slice %174 {offsets = [0, 0], sizes = [8, 256], strides = [1, 1]} : vector<8x384xf32> to vector<8x256xf32>
    %177 = arith.addf %175, %176 : vector<8x256xf32>
    %178 = arith.negf %177 : vector<8x256xf32>
    %179 = math.exp %178 : vector<8x256xf32>
    %cst_85 = arith.constant 1.000000e+00 : f32
    %180 = vector.broadcast %cst_85 : f32 to vector<8x256xf32>
    %181 = arith.addf %180, %179 : vector<8x256xf32>
    %182 = arith.divf %180, %181 : vector<8x256xf32>
    %183 = vector.extract_strided_slice %182 {offsets = [0, 0], sizes = [8, 128], strides = [1, 1]} : vector<8x256xf32> to vector<8x128xf32>
    %184 = vector.extract_strided_slice %182 {offsets = [0, 128], sizes = [8, 128], strides = [1, 1]} : vector<8x256xf32> to vector<8x128xf32>
    %185 = vector.extract_strided_slice %171 {offsets = [0, 256], sizes = [8, 128], strides = [1, 1]} : vector<8x384xf32> to vector<8x128xf32>
    %186 = vector.extract_strided_slice %174 {offsets = [0, 256], sizes = [8, 128], strides = [1, 1]} : vector<8x384xf32> to vector<8x128xf32>
    %187 = arith.mulf %183, %186 : vector<8x128xf32>
    %188 = arith.addf %185, %187 : vector<8x128xf32>
    %189 = math.tanh %188 : vector<8x128xf32>
    %cst_86 = arith.constant 1.000000e+00 : f32
    %190 = vector.broadcast %cst_86 : f32 to vector<8x128xf32>
    %191 = arith.subf %190, %184 : vector<8x128xf32>
    %192 = arith.mulf %191, %189 : vector<8x128xf32>
    %193 = arith.mulf %184, %170 : vector<8x128xf32>
    %194 = arith.addf %192, %193 : vector<8x128xf32>
    %195 = vector.extract_strided_slice %71 {offsets = [40, 0], sizes = [8, 384], strides = [1, 1]} : vector<64x384xf32> to vector<8x384xf32>
    %cst_87 = arith.constant dense<0.000000e+00> : vector<8x384xf32>
    %196 = tpu.matmul %194, %72, %cst_87 {dimension_numbers = #tpu.dot_dimension_numbers<[1], [0], [0], [1], [0, 0, 1, 1], [], []>} : vector<8x128xf32>, vector<128x384xf32>, vector<8x384xf32> -> vector<8x384xf32>
    %197 = vector.broadcast %73 : vector<1x384xf32> to vector<8x384xf32>
    %198 = arith.addf %196, %197 : vector<8x384xf32>
    %199 = vector.extract_strided_slice %195 {offsets = [0, 0], sizes = [8, 256], strides = [1, 1]} : vector<8x384xf32> to vector<8x256xf32>
    %200 = vector.extract_strided_slice %198 {offsets = [0, 0], sizes = [8, 256], strides = [1, 1]} : vector<8x384xf32> to vector<8x256xf32>
    %201 = arith.addf %199, %200 : vector<8x256xf32>
    %202 = arith.negf %201 : vector<8x256xf32>
    %203 = math.exp %202 : vector<8x256xf32>
    %cst_88 = arith.constant 1.000000e+00 : f32
    %204 = vector.broadcast %cst_88 : f32 to vector<8x256xf32>
    %205 = arith.addf %204, %203 : vector<8x256xf32>
    %206 = arith.divf %204, %205 : vector<8x256xf32>
    %207 = vector.extract_strided_slice %206 {offsets = [0, 0], sizes = [8, 128], strides = [1, 1]} : vector<8x256xf32> to vector<8x128xf32>
    %208 = vector.extract_strided_slice %206 {offsets = [0, 128], sizes = [8, 128], strides = [1, 1]} : vector<8x256xf32> to vector<8x128xf32>
    %209 = vector.extract_strided_slice %195 {offsets = [0, 256], sizes = [8, 128], strides = [1, 1]} : vector<8x384xf32> to vector<8x128xf32>
    %210 = vector.extract_strided_slice %198 {offsets = [0, 256], sizes = [8, 128], strides = [1, 1]} : vector<8x384xf32> to vector<8x128xf32>
    %211 = arith.mulf %207, %210 : vector<8x128xf32>
    %212 = arith.addf %209, %211 : vector<8x128xf32>
    %213 = math.tanh %212 : vector<8x128xf32>
    %cst_89 = arith.constant 1.000000e+00 : f32
    %214 = vector.broadcast %cst_89 : f32 to vector<8x128xf32>
    %215 = arith.subf %214, %208 : vector<8x128xf32>
    %216 = arith.mulf %215, %213 : vector<8x128xf32>
    %217 = arith.mulf %208, %194 : vector<8x128xf32>
    %218 = arith.addf %216, %217 : vector<8x128xf32>
    %219 = vector.extract_strided_slice %71 {offsets = [48, 0], sizes = [8, 384], strides = [1, 1]} : vector<64x384xf32> to vector<8x384xf32>
    %cst_90 = arith.constant dense<0.000000e+00> : vector<8x384xf32>
    %220 = tpu.matmul %218, %72, %cst_90 {dimension_numbers = #tpu.dot_dimension_numbers<[1], [0], [0], [1], [0, 0, 1, 1], [], []>} : vector<8x128xf32>, vector<128x384xf32>, vector<8x384xf32> -> vector<8x384xf32>
    %221 = vector.broadcast %73 : vector<1x384xf32> to vector<8x384xf32>
    %222 = arith.addf %220, %221 : vector<8x384xf32>
    %223 = vector.extract_strided_slice %219 {offsets = [0, 0], sizes = [8, 256], strides = [1, 1]} : vector<8x384xf32> to vector<8x256xf32>
    %224 = vector.extract_strided_slice %222 {offsets = [0, 0], sizes = [8, 256], strides = [1, 1]} : vector<8x384xf32> to vector<8x256xf32>
    %225 = arith.addf %223, %224 : vector<8x256xf32>
    %226 = arith.negf %225 : vector<8x256xf32>
    %227 = math.exp %226 : vector<8x256xf32>
    %cst_91 = arith.constant 1.000000e+00 : f32
    %228 = vector.broadcast %cst_91 : f32 to vector<8x256xf32>
    %229 = arith.addf %228, %227 : vector<8x256xf32>
    %230 = arith.divf %228, %229 : vector<8x256xf32>
    %231 = vector.extract_strided_slice %230 {offsets = [0, 0], sizes = [8, 128], strides = [1, 1]} : vector<8x256xf32> to vector<8x128xf32>
    %232 = vector.extract_strided_slice %230 {offsets = [0, 128], sizes = [8, 128], strides = [1, 1]} : vector<8x256xf32> to vector<8x128xf32>
    %233 = vector.extract_strided_slice %219 {offsets = [0, 256], sizes = [8, 128], strides = [1, 1]} : vector<8x384xf32> to vector<8x128xf32>
    %234 = vector.extract_strided_slice %222 {offsets = [0, 256], sizes = [8, 128], strides = [1, 1]} : vector<8x384xf32> to vector<8x128xf32>
    %235 = arith.mulf %231, %234 : vector<8x128xf32>
    %236 = arith.addf %233, %235 : vector<8x128xf32>
    %237 = math.tanh %236 : vector<8x128xf32>
    %cst_92 = arith.constant 1.000000e+00 : f32
    %238 = vector.broadcast %cst_92 : f32 to vector<8x128xf32>
    %239 = arith.subf %238, %232 : vector<8x128xf32>
    %240 = arith.mulf %239, %237 : vector<8x128xf32>
    %241 = arith.mulf %232, %218 : vector<8x128xf32>
    %242 = arith.addf %240, %241 : vector<8x128xf32>
    %243 = vector.extract_strided_slice %71 {offsets = [56, 0], sizes = [8, 384], strides = [1, 1]} : vector<64x384xf32> to vector<8x384xf32>
    %cst_93 = arith.constant dense<0.000000e+00> : vector<8x384xf32>
    %244 = tpu.matmul %242, %72, %cst_93 {dimension_numbers = #tpu.dot_dimension_numbers<[1], [0], [0], [1], [0, 0, 1, 1], [], []>} : vector<8x128xf32>, vector<128x384xf32>, vector<8x384xf32> -> vector<8x384xf32>
    %245 = vector.broadcast %73 : vector<1x384xf32> to vector<8x384xf32>
    %246 = arith.addf %244, %245 : vector<8x384xf32>
    %247 = vector.extract_strided_slice %243 {offsets = [0, 0], sizes = [8, 256], strides = [1, 1]} : vector<8x384xf32> to vector<8x256xf32>
    %248 = vector.extract_strided_slice %246 {offsets = [0, 0], sizes = [8, 256], strides = [1, 1]} : vector<8x384xf32> to vector<8x256xf32>
    %249 = arith.addf %247, %248 : vector<8x256xf32>
    %250 = arith.negf %249 : vector<8x256xf32>
    %251 = math.exp %250 : vector<8x256xf32>
    %cst_94 = arith.constant 1.000000e+00 : f32
    %252 = vector.broadcast %cst_94 : f32 to vector<8x256xf32>
    %253 = arith.addf %252, %251 : vector<8x256xf32>
    %254 = arith.divf %252, %253 : vector<8x256xf32>
    %255 = vector.extract_strided_slice %254 {offsets = [0, 0], sizes = [8, 128], strides = [1, 1]} : vector<8x256xf32> to vector<8x128xf32>
    %256 = vector.extract_strided_slice %254 {offsets = [0, 128], sizes = [8, 128], strides = [1, 1]} : vector<8x256xf32> to vector<8x128xf32>
    %257 = vector.extract_strided_slice %243 {offsets = [0, 256], sizes = [8, 128], strides = [1, 1]} : vector<8x384xf32> to vector<8x128xf32>
    %258 = vector.extract_strided_slice %246 {offsets = [0, 256], sizes = [8, 128], strides = [1, 1]} : vector<8x384xf32> to vector<8x128xf32>
    %259 = arith.mulf %255, %258 : vector<8x128xf32>
    %260 = arith.addf %257, %259 : vector<8x128xf32>
    %261 = math.tanh %260 : vector<8x128xf32>
    %cst_95 = arith.constant 1.000000e+00 : f32
    %262 = vector.broadcast %cst_95 : f32 to vector<8x128xf32>
    %263 = arith.subf %262, %256 : vector<8x128xf32>
    %264 = arith.mulf %263, %261 : vector<8x128xf32>
    %265 = arith.mulf %256, %242 : vector<8x128xf32>
    %266 = arith.addf %264, %265 : vector<8x128xf32>
    %c0_96 = arith.constant 0 : index
    %c0_97 = arith.constant 0 : index
    %267 = vector.load %arg6[%c0_96, %c0_97] : memref<128x4xf32, #tpu.memory_space<vmem>>, vector<128x4xf32>
    %cst_98 = arith.constant dense<0.000000e+00> : vector<8x4xf32>
    %268 = tpu.matmul %266, %267, %cst_98 {dimension_numbers = #tpu.dot_dimension_numbers<[1], [0], [0], [1], [0, 0, 1, 1], [], []>} : vector<8x128xf32>, vector<128x4xf32>, vector<8x4xf32> -> vector<8x4xf32>
    %c0_99 = arith.constant 0 : index
    %c0_100 = arith.constant 0 : index
    %269 = vector.load %arg7[%c0_99, %c0_100] : memref<1x4xf32, #tpu.memory_space<vmem>>, vector<1x4xf32>
    %270 = vector.broadcast %269 : vector<1x4xf32> to vector<8x4xf32>
    %271 = arith.addf %268, %270 : vector<8x4xf32>
    %272 = vector.extract_strided_slice %271 {offsets = [0, 0], sizes = [2, 4], strides = [1, 1]} : vector<8x4xf32> to vector<2x4xf32>
    %c0_101 = arith.constant 0 : index
    %c0_102 = arith.constant 0 : index
    %273 = vector.load %arg8[%c0_101, %c0_102] : memref<2x4xf32, #tpu.memory_space<vmem>>, vector<2x4xf32>
    tpu.vector_store %arg8[%c0_101, %c0_102], %272 {strides = array<i32>} : memref<2x4xf32, #tpu.memory_space<vmem>>, vector<2x4xf32>,
    return
  }
}

</mosaic_0001>

<bundles_post_ra>
// kernel: tpu_custom_call.1
= control target key start
LH: loop header
LB: loop body
LE: loop exit
PB: predicated region body
PF: predicated region fallthrough
CT: control target
= control target key end

     0   :  { %13 = vsyncpa [#allocation6], 0  ;;  %s3797_s0 = inlined_call_operand.vmem [shape: s32[2,8], index: 0, kind: input, shape index: {}]   ;;  %s3798_s1 = inlined_call_operand.vmem [shape: f32[50,16], index: 1, kind: input, shape index: {}]   ;;  %s3799_s2 = inlined_call_operand.vmem [shape: f32[16,384], index: 2, kind: input, shape index: {}]   ;;  %s3800_s3 = inlined_call_operand.hbm [shape: f32[128,384], index: 3, kind: input, shape index: {}]   ;;  %s3801_s4 = inlined_call_operand.vmem [shape: f32[1,384], index: 4, kind: input, shape index: {}]   ;;  %s3802_s5 = inlined_call_operand.vmem [shape: f32[1,384], index: 5, kind: input, shape index: {}]   ;;  %s3803_s6 = inlined_call_operand.vmem [shape: f32[128,4], index: 6, kind: input, shape index: {}]   ;;  %s3804_s7 = inlined_call_operand.vmem [shape: f32[1,4], index: 7, kind: input, shape index: {}]   ;;  %s3805_s8 = inlined_call_operand.hbm [shape: f32[2,4], index: 8, kind: output, shape index: {}]  }
   0x1   :  { %14 = vsyncpa [#allocation4], 0 }
   0x2   :  { %15 = vsyncpa [#allocation5], 0  ;;  %s22_s29 = sshll.u32 %s3797_s0, 4  ;;  %s23_s29 = int_to_ptr.vmem [resolvable:$true] %s22_s29 }
   0x3   :  { %s3050_s30 = scalar_lea.vmem %s23_s29, 32  ;;  %p3055_p1 = scmp.lt.s32.totalorder %s23_s29, %s23_s29 }
   0x4   :  { %p3051_p0 = scmp.ne.s32.totalorder %s23_s29, %s3050_s30  ;;  %p3056_p2 = scmp.lt.s32.totalorder %s3050_s30, %s3050_s30 }
   0x6   :  { %p3057_p3 = por %p3056_p2, %p3055_p1 }
   0x8   :  { %p3058_p4 = pnand %p3057_p3, %p3051_p0 }
   0xa   :  { %3061 = shalt.err (!%p3058_p4)
}
   0xb   :  { %s3112_s9 = smov [#allocation3]   ;;  %s3113_s10 = smov [#allocation7]  }
   0xc   :  { %25 = dma.vmem_to_smem %s23_s29, 32, %s3112_s9, [#allocation6]  }
   0xd   :  { %s35_s11 = sshll.u32 %s3113_s10, 4  ;;  %s3062_s14 = scalar_lea.hbm %s3800_s3, 6144  ;;  %s36_s11 = int_to_ptr.vmem [resolvable:$true] %s35_s11 }
   0xe   :  { %p3063_p5 = scmp.ne.s32.totalorder %s3800_s3, %s3062_s14  ;;  %p3066_p6 = scmp.lt.u32.totalorder %s3062_s14, %s3800_s3 }
  0x10   :  { %p3068_p7 = pnand %p3066_p6, %p3063_p5 }
  0x12   :  { %3071 = shalt.err (!%p3068_p7)
}
  0x13   :  { %s3072_s18 = scalar_lea.vmem %s36_s11, 6144  ;;  %p3077_p9 = scmp.lt.s32.totalorder %s36_s11, %s36_s11 }
  0x14   :  { %p3073_p8 = scmp.ne.s32.totalorder %s36_s11, %s3072_s18  ;;  %p3078_p10 = scmp.lt.s32.totalorder %s3072_s18, %s3072_s18 }
  0x16   :  { %p3079_p11 = por %p3078_p10, %p3077_p9 }
  0x18   :  { %p3080_p12 = pnand %p3079_p11, %p3073_p8 }
  0x1a   :  { %3083 = shalt.err (!%p3080_p12)
}
  0x1b   :  { %s3114_s19 = smov 384   ;;  %s3115_s20 = smov 24  }
  0x1c   :  { %41 = dma.hbm_to_vmem [thread:$0]  %s3800_s3, 6144, %s36_s11, [#allocation4], %s3114_s19, %s3114_s19, %s3115_s20  }
  0x1d   :  { %3106 = dma.done.wait [#allocation6], 32  }
  0x1e   :  { %3107 = vsyncadd [#allocation6], 4294967264 }
  0x1f   :  { %3108 = dma.done.wait [#allocation4], 6144  }
  0x20   :  { %3109 = vsyncadd [#allocation4], 4294961152 }
  0x21   :  { %56 = sfence }
  0x22   :  { %v140_v0 = vld [vmem:[%s3799_s2 + $0x8] sm:$0xff]  ;;  %v143_v1 = vld [vmem:[%s3799_s2 + $0x20] sm:$0xff]  ;;  %vm57_vm0 = vcmask 130048   ;;  %v142_v4 = vld [vmem:[%s3799_s2 + $0x18] sm:$0xff]  ;;  %v3116_v5 = vmov 0.0   ;;  %s66_s30 = sld [smem:[#allocation3]] }
  0x23   :  { %v139_v2 = vld [vmem:[%s3799_s2] sm:$0xff]  ;;  %v2434_v3 = vpack.c.bf16 %v143_v1, %v140_v0  ;;  %250 = vmatprep.mubr.f32.mxu0 %v3116_v5  ;;  %v405_v6 = vld [vmem:[#allocation7 + $0x8] sm:$0xff]  ;;  %58 = vst.msk [vmem:[#allocation2] sm:$0xff] %vm57_vm0, %v3116_v5  ;;  %59 = vst.msk [vmem:[#allocation2 + $0x8] sm:$0xff] %vm57_vm0, %v3116_v5  ;;  %s1892_s9 = sld [smem:[#allocation3 + $0x80]]  ;;  %s1893_s10 = sld [smem:[#allocation3 + $0x1]] }
  0x24   :  { %v408_v7 = vld [vmem:[#allocation7 + $0x20] sm:$0xff]  ;;  %60 = vst.msk [vmem:[#allocation2 + $0x10] sm:$0xff] %vm57_vm0, %v3116_v5  ;;  %61 = vst.msk [vmem:[#allocation2 + $0x18] sm:$0xff] %vm57_vm0, %v3116_v5  ;;  %v2436_v8 = vpack.c.bf16 %v142_v4, %v139_v2  ;;  %s1894_s11 = sld [smem:[#allocation3 + $0x81]]  ;;  %s1895_s12 = sld [smem:[#allocation3 + $0x2]]  ;;  %vm69_vm1 = vcmask 122880  }
  0x25   :  { %62 = vst.msk [vmem:[#allocation2 + $0x20] sm:$0xff] %vm57_vm0, %v3116_v5  ;;  %63 = vst.msk [vmem:[#allocation2 + $0x28] sm:$0xff] %vm57_vm0, %v3116_v5  ;;  %v3209_v9 = vpack.c.bf16 %v408_v7, %v405_v6  ;;  %2435 = vmatprep.subr.bf16.mxu0 %v2434_v3  ;;  %s1896_s13 = sld [smem:[#allocation3 + $0x82]]  ;;  %s3212_s14 = sld [smem:[#allocation3 + $0x3]]  ;;  %v404_v12 = vld [vmem:[#allocation7] sm:$0xff]  ;;  %v407_v15 = vld [vmem:[#allocation7 + $0x18] sm:$0xff] }
  0x26   :  { %64 = vst.msk [vmem:[#allocation2 + $0x30] sm:$0xff] %vm57_vm0, %v3116_v5  ;;  %65 = vst.msk [vmem:[#allocation2 + $0x38] sm:$0xff] %vm57_vm0, %v3116_v5  ;;  %2437 = vmatpush1.bf16.msra.mxu0 %v2436_v8  ;;  %s3214_s15 = sld [smem:[#allocation3 + $0x83]]  ;;  %s3219_s18 = sld [smem:[#allocation3 + $0x4]]  ;;  %v411_v16 = vld [vmem:[#allocation7 + $0x38] sm:$0xff]  ;;  %v141_v19 = vld [vmem:[%s3799_s2 + $0x10] sm:$0xff]  ;;  %v3274_v26 = vpack.c.bf16 %v407_v15, %v404_v12 }
  0x27   :  { %2443 = vmatprep.subr.bf16.mxu0 %v3209_v9  ;;  %s3224_s22 = sld [smem:[#allocation3 + $0x84]]  ;;  %s3244_s0 = sld [smem:[#allocation3 + $0x85]]  ;;  %v144_v20 = vld [vmem:[%s3799_s2 + $0x28] sm:$0xff]  ;;  %v414_v21 = vld [vmem:[#allocation7 + $0x50] sm:$0xff]  ;;  %v420_v35 = vld [vmem:[#allocation7 + $0x80] sm:$0xff]  ;;  %v3117_v37 = vmov 0.0|0.0  }
  0x28   :  { %s67_s17 = scalar_lea.vmem %s3798_s1, %s66_s30  ;;  %v2438_v24 = vpack.c.bf16 %v144_v20, %v141_v19  ;;  %s3272_s29 = sld [smem:[#allocation3 + $0x6]]  ;;  %v410_v27 = vld [vmem:[#allocation7 + $0x30] sm:$0xff]  ;;  %v3279_v30 = vpack.c.bf16 %v414_v21, %v411_v16  ;;  %v413_v31 = vld [vmem:[#allocation7 + $0x48] sm:$0xff]  ;;  %v412_v42 = vld [vmem:[#allocation7 + $0x40] sm:$0xff]  ;;  %vm3118_vm2 = vmmov 0   ;;  %vm1858_vm3 = vcmask 25600  }
  0x29   :  { %v68_v10 = vld [vmem:[%s67_s17] sm:$0x1]  ;;  %s72_s21 = scalar_lea.vmem %s3798_s1, %s1892_s9  ;;  %s76_s25 = scalar_lea.vmem %s3798_s1, %s1893_s10  ;;  %v406_v29 = vld [vmem:[#allocation7 + $0x10] sm:$0xff]  ;;  %v417_v32 = vld [vmem:[#allocation7 + $0x68] sm:$0xff]  ;;  %v3302_v41 = vpack.c.bf16 %v413_v31, %v410_v27 }
  0x2a   :  { %70 = vst.msk [vmem:[#allocation2] sm:$0x1] %vm69_vm1, %v68_v10  ;;  %v73_v11 = vld [vmem:[%s72_s21] sm:$0x1]  ;;  %s80_s28 = scalar_lea.vmem %s3798_s1, %s1894_s11  ;;  %s84_s30 = scalar_lea.vmem %s3798_s1, %s1895_s12  ;;  %2439 = vmatprep.subr.bf16.mxu1 %v2438_v24  ;;  %v409_v33 = vld [vmem:[#allocation7 + $0x28] sm:$0xff]  ;;  %v415_v43 = vld [vmem:[#allocation7 + $0x58] sm:$0xff]  ;;  %v3306_v44 = vpack.c.bf16 %v420_v35, %v417_v32 }
  0x2b   :  { %74 = vst.msk [vmem:[#allocation2 + $0x1] sm:$0x1] %vm69_vm1, %v73_v11  ;;  %v77_v13 = vld [vmem:[%s76_s25] sm:$0x1]  ;;  %s3237_s9 = sld [smem:[#allocation3 + $0x5]]  ;;  %s88_s16 = scalar_lea.vmem %s3798_s1, %s1896_s13  ;;  %2441 = vmatpush3.bf16.msra.mxu1 %v2438_v24  ;;  %v3293_v38 = vpack.c.bf16 %v409_v33, %v406_v29  ;;  %v419_v47 = vld [vmem:[#allocation7 + $0x78] sm:$0xff]  ;;  %v3318_v51 = vpack.c.bf16 %v415_v43, %v412_v42 }
  0x2c   :  { %v81_v14 = vld [vmem:[%s80_s28] sm:$0x1]  ;;  %78 = vst.msk [vmem:[#allocation2 + $0x8] sm:$0x1] %vm69_vm1, %v77_v13  ;;  %s92_s19 = scalar_lea.vmem %s3798_s1, %s3212_s14  ;;  %s96_s23 = scalar_lea.vmem %s3798_s1, %s3214_s15  ;;  %2474 = vmatprep.subr.bf16.mxu1 %v3117_v37  ;;  %v423_v48 = vld [vmem:[#allocation7 + $0x98] sm:$0xff]  ;;  %v426_v49 = vld [vmem:[#allocation7 + $0xb0] sm:$0xff] }
  0x2d   :  { %82 = vst.msk [vmem:[#allocation2 + $0x9] sm:$0x1] %vm69_vm1, %v81_v14  ;;  %v85_v17 = vld [vmem:[%s84_s30] sm:$0x1]  ;;  %s100_s14 = scalar_lea.vmem %s3798_s1, %s3219_s18  ;;  %s104_s2 = scalar_lea.vmem %s3798_s1, %s3224_s22  ;;  %v418_v53 = vld [vmem:[#allocation7 + $0x70] sm:$0xff]  ;;  %v421_v54 = vld [vmem:[#allocation7 + $0x88] sm:$0xff]  ;;  %v3338_v59 = vpack.c.bf16 %v426_v49, %v423_v48 }
  0x2e   :  { %86 = vst.msk [vmem:[#allocation2 + $0x10] sm:$0x1] %vm69_vm1, %v85_v17  ;;  %v89_v18 = vld [vmem:[%s88_s16] sm:$0x1]  ;;  %s3277_s18 = sld [smem:[#allocation3 + $0x86]]  ;;  %s3286_s11 = sld [smem:[#allocation3 + $0x7]]  ;;  %v3344_v1 = vpack.c.bf16 %v421_v54, %v418_v53 }
  0x2f   :  { %90 = vst.msk [vmem:[#allocation2 + $0x11] sm:$0x1] %vm69_vm1, %v89_v18  ;;  %v93_v22 = vld [vmem:[%s92_s19] sm:$0x1]  ;;  %s112_s17 = scalar_lea.vmem %s3798_s1, %s3244_s0  ;;  %s3295_s19 = sld [smem:[#allocation3 + $0x87]]  ;;  %v422_v57 = vld [vmem:[#allocation7 + $0x90] sm:$0xff] }
  0x30   :  { %v97_v23 = vld [vmem:[%s96_s23] sm:$0x1]  ;;  %94 = vst.msk [vmem:[#allocation2 + $0x18] sm:$0x1] %vm69_vm1, %v93_v22  ;;  %s116_s20 = scalar_lea.vmem %s3798_s1, %s3272_s29  ;;  %v425_v60 = vld [vmem:[#allocation7 + $0xa8] sm:$0xff]  ;;  %v427_v3 = vld [vmem:[#allocation7 + $0xb8] sm:$0xff] }
  0x31   :  { %98 = vst.msk [vmem:[#allocation2 + $0x19] sm:$0x1] %vm69_vm1, %v97_v23  ;;  %v101_v25 = vld [vmem:[%s100_s14] sm:$0x1]  ;;  %s108_s10 = scalar_lea.vmem %s3798_s1, %s3237_s9  ;;  %v429_v63 = vld [vmem:[#allocation7 + $0xc8] sm:$0xff]  ;;  %v3351_v4 = vpack.c.bf16 %v425_v60, %v422_v57  ;;  %v431_v10 = vld [vmem:[#allocation7 + $0xd8] sm:$0xff] }
  0x32   :  { %102 = vst.msk [vmem:[#allocation2 + $0x20] sm:$0x1] %vm69_vm1, %v101_v25  ;;  %v105_v28 = vld [vmem:[%s104_s2] sm:$0x1]  ;;  %v435_v11 = vld [vmem:[#allocation7 + $0xf8] sm:$0xff]  ;;  %v438_v12 = vld [vmem:[#allocation7 + $0x110] sm:$0xff] }
  0x33   :  { %106 = vst.msk [vmem:[#allocation2 + $0x21] sm:$0x1] %vm69_vm1, %v105_v28  ;;  %v131_v34 = vld [vmem:[#allocation2] sm:$0xff]  ;;  %v430_v14 = vld [vmem:[#allocation7 + $0xd0] sm:$0xff]  ;;  %v433_v15 = vld [vmem:[#allocation7 + $0xe8] sm:$0xff]  ;;  %v3367_v18 = vpack.c.bf16 %v438_v12, %v435_v11  ;;  %s3119_s30 = smov [#allocation8]  }
  0x34   :  { %v109_v36 = vld [vmem:[%s108_s10] sm:$0x1]  ;;  %1907 = vmatmul.mubr.msk.f32.vlgmr.msra.gmra.mrb[0].mxu0 %vm57_vm0, %v131_v34  ;;  %2107 = vmatprep.mubr.msk.f32.mxu1 %vm57_vm0, %v131_v34  ;;  %v132_v40 = vld [vmem:[#allocation2 + $0x8] sm:$0xff]  ;;  %s120_s24 = scalar_lea.vmem %s3798_s1, %s3277_s18  ;;  %s124_s13 = scalar_lea.vmem %s3798_s1, %s3286_s11  ;;  %v434_v19 = vld [vmem:[#allocation7 + $0xf0] sm:$0xff]  ;;  %v3371_v23 = vpack.c.bf16 %v433_v15, %v430_v14 }
  0x35   :  { %110 = vst.msk [vmem:[#allocation2 + $0x28] sm:$0x1] %vm69_vm1, %v109_v36  ;;  %v113_v39 = vld [vmem:[%s112_s17] sm:$0x1]  ;;  %2445 = vmatpush1.bf16.msra.mxu0 %v3274_v26  ;;  %256 = vmatprep.mubr.f32.mxu0 %v3116_v5  ;;  %s128_s14 = scalar_lea.vmem %s3798_s1, %s3295_s19  ;;  %v437_v20 = vld [vmem:[#allocation7 + $0x108] sm:$0xff]  ;;  %v439_v25 = vld [vmem:[#allocation7 + $0x118] sm:$0xff] }
  0x36   :  { %114 = vst.msk [vmem:[#allocation2 + $0x29] sm:$0x1] %vm69_vm1, %v113_v39  ;;  %2447 = vmatprep.subr.bf16.mxu0 %v3279_v30  ;;  %v133_v45 = vld [vmem:[#allocation2 + $0x10] sm:$0xff]  ;;  %v416_v46 = vld [vmem:[#allocation7 + $0x60] sm:$0xff]  ;;  %2108 = vmatmul.mubr.msk.f32.vlgmr.msra.gmra.mrb[0].mxu1 %vm57_vm0, %v132_v40  ;;  %v441_v21 = vld [vmem:[#allocation7 + $0x128] sm:$0xff]  ;;  %v3377_v27 = vpack.c.bf16 %v437_v20, %v434_v19  ;;  %s1866_s10 = sshll.u32 %s3119_s30, 4  ;;  %s1867_s10 = int_to_ptr.vmem [resolvable:$true] %s1866_s10 }
  0x37   :  { %v117_v50 = vld [vmem:[%s116_s20] sm:$0x1]  ;;  %2476 = vmatpush3.bf16.msra.mxu1 %v3293_v38  ;;  %2110 = vmatprep.mubr.msk.f32.mxu1 %vm57_vm0, %v133_v45  ;;  %v3330_v55 = vpack.c.bf16 %v419_v47, %v416_v46  ;;  %v443_v32 = vld [vmem:[#allocation7 + $0x138] sm:$0xff]  ;;  %v450_v34 = vld [vmem:[#allocation7 + $0x170] sm:$0xff]  ;;  %s3084_s11 = scalar_lea.vmem %s1867_s10, 32  ;;  %p3089_p0 = scmp.lt.s32.totalorder %s1867_s10, %s1867_s10 }
  0x38   :  { %1908 = vmatmul.mubr.msk.f32.gmra.mrb[2].mxu0 %vm57_vm0, %v132_v40  ;;  %118 = vst.msk [vmem:[#allocation2 + $0x30] sm:$0x1] %vm69_vm1, %v117_v50  ;;  %v121_v52 = vld [vmem:[%s120_s24] sm:$0x1]  ;;  %2477 = vmatprep.subr.bf16.mxu1 %v3117_v37  ;;  %v134_v56 = vld [vmem:[#allocation2 + $0x18] sm:$0xff]  ;;  %v442_v36 = vld [vmem:[#allocation7 + $0x130] sm:$0xff]  ;;  %p3085_p13 = scmp.ne.s32.totalorder %s1867_s10, %s3084_s11  ;;  %p3090_p1 = scmp.lt.s32.totalorder %s3084_s11, %s3084_s11 }
  0x39   :  { %2449 = vmatpush1.bf16.msra.mxu0 %v3302_v41  ;;  %262 = vmatprep.mubr.f32.mxu0 %v3116_v5  ;;  %122 = vst.msk [vmem:[#allocation2 + $0x31] sm:$0x1] %vm69_vm1, %v121_v52  ;;  %v125_v58 = vld [vmem:[%s124_s13] sm:$0x1]  ;;  %v447_v33 = vld [vmem:[#allocation7 + $0x158] sm:$0xff]  ;;  %v445_v39 = vld [vmem:[#allocation7 + $0x148] sm:$0xff]  ;;  %v147_v52 = vlaneseq }
  0x3a   :  { %2451 = vmatprep.subr.bf16.mxu0 %v3306_v44  ;;  %v135_v61 = vld [vmem:[#allocation2 + $0x20] sm:$0xff]  ;;  %126 = vst.msk [vmem:[#allocation2 + $0x38] sm:$0x1] %vm69_vm1, %v125_v58  ;;  %2111 = vmatmul.mubr.msk.f32.gmra.mrb[2].mxu1 %vm57_vm0, %v134_v56  ;;  %v3395_v42 = vpack.c.bf16 %v450_v34, %v447_v33  ;;  %v446_v43 = vld [vmem:[#allocation7 + $0x150] sm:$0xff]  ;;  %v3398_v46 = vpack.c.bf16 %v445_v39, %v442_v36  ;;  %v451_v48 = vld [vmem:[#allocation7 + $0x178] sm:$0xff]  ;;  %p3091_p2 = por %p3090_p1, %p3089_p0 }
  0x3b   :  { %v129_v62 = vld [vmem:[%s128_s14] sm:$0x1]  ;;  %2479 = vmatpush3.bf16.msra.mxu1 %v3318_v51  ;;  %2113 = vmatprep.mubr.msk.f32.mxu1 %vm57_vm0, %v135_v61  ;;  %v148_v53 = vshrl.u32 %v147_v52, 7 }
  0x3c   :  { %v432_v0 = vld [vmem:[#allocation7 + $0xe0] sm:$0xff]  ;;  %130 = vst.msk [vmem:[#allocation2 + $0x39] sm:$0x1] %vm69_vm1, %v129_v62  ;;  %1909 = vmatmul.mubr.msk.f32.gmra.mrb[4].mxu0 %vm57_vm0, %v133_v45  ;;  %2480 = vmatprep.subr.bf16.mxu1 %v3117_v37  ;;  %v449_v45 = vld [vmem:[#allocation7 + $0x168] sm:$0xff]  ;;  %p3092_p3 = pnand %p3091_p2, %p3085_p13 }
  0x3d   :  { %v424_v2 = vld [vmem:[#allocation7 + $0xa0] sm:$0xff]  ;;  %2453 = vmatpush1.bf16.msra.mxu0 %v3330_v55  ;;  %268 = vmatprep.mubr.f32.mxu0 %v3116_v5  ;;  %v136_v6 = vld [vmem:[#allocation2 + $0x28] sm:$0xff]  ;;  %v3354_v7 = vpack.c.bf16 %v432_v0, %v429_v63  ;;  %v3404_v49 = vpack.c.bf16 %v449_v45, %v446_v43  ;;  %v157_v54 = vsub.s32 2, %v148_v53  ;;  %v153_v20 = vsub.s32 1, %v148_v53 }
  0x3e   :  { %2455 = vmatprep.subr.bf16.mxu0 %v3338_v59  ;;  %v428_v8 = vld [vmem:[#allocation7 + $0xc0] sm:$0xff]  ;;  %2114 = vmatmul.mubr.msk.f32.gmra.mrb[4].mxu1 %vm57_vm0, %v136_v6  ;;  %v3358_v13 = vpack.c.bf16 %v427_v3, %v424_v2 }
  0x3f   :  { %2482 = vmatpush3.bf16.msra.mxu1 %v3344_v1  ;;  %v3364_v16 = vpack.c.bf16 %v431_v10, %v428_v8  ;;  %v444_v22 = vld [vmem:[#allocation7 + $0x140] sm:$0xff] }
  0x40   :  { %1910 = vmatmul.mubr.msk.f32.gmra.mrb[6].mxu0 %vm57_vm0, %v134_v56  ;;  %2483 = vmatprep.subr.bf16.mxu1 %v3117_v37  ;;  %v137_v17 = vld [vmem:[#allocation2 + $0x30] sm:$0xff]  ;;  %v436_v24 = vld [vmem:[#allocation7 + $0x100] sm:$0xff]  ;;  %v3380_v29 = vpack.c.bf16 %v444_v22, %v441_v21 }
  0x41   :  { %2457 = vmatpush1.bf16.msra.mxu0 %v3351_v4  ;;  %274 = vmatprep.mubr.f32.mxu0 %v3116_v5  ;;  %v440_v31 = vld [vmem:[#allocation7 + $0x120] sm:$0xff]  ;;  %v3384_v35 = vpack.c.bf16 %v439_v25, %v436_v24 }
  0x42   :  { %2459 = vmatprep.subr.bf16.mxu0 %v3354_v7  ;;  %2116 = vmatprep.mubr.msk.f32.mxu1 %vm57_vm0, %v137_v17  ;;  %v3392_v40 = vpack.c.bf16 %v443_v32, %v440_v31  ;;  %v448_v47 = vld [vmem:[#allocation7 + $0x160] sm:$0xff] }
  0x43   :  { %2485 = vmatpush3.bf16.msra.mxu1 %v3358_v13  ;;  %v138_v28 = vld [vmem:[#allocation2 + $0x38] sm:$0xff]  ;;  %v3408_v50 = vpack.c.bf16 %v451_v48, %v448_v47  ;;  %v145_v56 = vld [vmem:[%s3801_s4] sm:$0x7] }
  0x44   :  { %1911 = vmatmul.mubr.msk.f32.gmra.mrb[8].mxu0 %vm57_vm0, %v135_v61  ;;  %2486 = vmatprep.subr.bf16.mxu1 %v3117_v37  ;;  %v158_v57 = vrot.slane %v145_v56, %v157_v54  ;;  %v452_v19 = vld [vmem:[%s3802_s5] sm:$0x7]  ;;  %v154_v24 = vrot.slane %v145_v56, %v153_v20 }
  0x45   :  { %2461 = vmatpush1.bf16.msra.mxu0 %v3364_v16  ;;  %280 = vmatprep.mubr.f32.mxu0 %v3116_v5  ;;  %v461_v25 = vrot.slane %v452_v19, %v153_v20 }
  0x46   :  { %2463 = vmatprep.subr.bf16.mxu0 %v3367_v18  ;;  %2117 = vmatmul.mubr.msk.f32.gmra.mrb[6].mxu1 %vm57_vm0, %v138_v28 }
  0x47   :  { %2488 = vmatpush3.bf16.msra.mxu1 %v3371_v23  ;;  %2151 = vmatprep.mubr.msk.f32.mxu1 %vm3118_vm2, %v3116_v5  ;;  %v3476_v32 = vadd.f32 %v461_v25, %v154_v24 }
  0x48   :  { %1912 = vmatmul.mubr.msk.f32.gmra.mrb[10].mxu0 %vm57_vm0, %v136_v6  ;;  %2489 = vmatprep.subr.bf16.mxu1 %v3117_v37 }
  0x49   :  { %2465 = vmatpush1.bf16.msra.mxu0 %v3377_v27  ;;  %286 = vmatprep.mubr.f32.mxu0 %v3116_v5 }
  0x4a   :  { %2467 = vmatprep.subr.bf16.mxu0 %v3380_v29 }
  0x4b   :  { %2491 = vmatpush3.bf16.msra.mxu1 %v3384_v35 }
  0x4c   :  { %1913 = vmatmul.mubr.msk.f32.gmra.mrb[12].mxu0 %vm57_vm0, %v137_v17  ;;  %2492 = vmatprep.subr.bf16.mxu1 %v3117_v37  ;;  %v149_v17 = vsub.s32 0, %v148_v53  ;;  %v3480_v53 = vrot.slane %v452_v19, %v157_v54 }
  0x4d   :  { %2469 = vmatpush1.bf16.msra.mxu0 %v3392_v40  ;;  %292 = vmatprep.mubr.f32.mxu0 %v3116_v5 }
  0x4e   :  { %2471 = vmatprep.subr.bf16.mxu0 %v3395_v42  ;;  %v150_v21 = vrot.slane %v145_v56, %v149_v17  ;;  %v457_v22 = vrot.slane %v452_v19, %v149_v17 }
  0x4f   :  { %2494 = vmatpush3.bf16.msra.mxu1 %v3398_v46 }
  0x50   :  { %1914 = vmatmul.mubr.msk.f32.gmra.mrb[14].mxu0 %vm57_vm0, %v138_v28  ;;  %2495 = vmatprep.subr.bf16.mxu1 %v3117_v37  ;;  %v3474_v28 = vadd.f32 %v457_v22, %v150_v21 }
  0x51   :  { %2473 = vmatpush1.bf16.msra.mxu0 %v3404_v49  ;;  %533 = vmatprep.mubr.f32.mxu0 %v3116_v5 }
  0x52   :  { %2499 = vmatprep.subr.bf16.mxu0 %v3209_v9 }
  0x53   :  { %2497 = vmatpush3.bf16.msra.mxu1 %v3408_v50 }
  0x54   :  { %534 = vmatmul.mubr.f32.vlgmr.msra.gmra.mrb[0].mxu0 %v3116_v5  ;;  %2530 = vmatprep.subr.bf16.mxu1 %v3117_v37 }
  0x55   :  { %2501 = vmatpush1.bf16.msra.mxu0 %v3274_v26  ;;  %695 = vmatprep.mubr.f32.mxu0 %v3116_v5 }
  0x56   :  { %2152 = vmatmul.mubr.f32.vlgmr.msra.gmra.mrb[8].mxu1 %v3116_v5  ;;  %2503 = vmatprep.subr.bf16.mxu0 %v3279_v30 }
  0x57   :  { %2532 = vmatpush3.bf16.msra.mxu1 %v3293_v38  ;;  %2186 = vmatprep.mubr.msk.f32.mxu1 %vm3118_vm2, %v3116_v5 }
  0x58   :  { %2533 = vmatprep.subr.bf16.mxu1 %v3117_v37 }
  0x59   :  { %2505 = vmatpush1.bf16.msra.mxu0 %v3302_v41 }
  0x5a   :  { %2507 = vmatprep.subr.bf16.mxu0 %v3306_v44 }
  0x5b   :  { %2535 = vmatpush3.bf16.msra.mxu1 %v3318_v51 }
  0x5c   :  { %2536 = vmatprep.subr.bf16.mxu1 %v3117_v37 }
  0x5d   :  { %2509 = vmatpush1.bf16.msra.mxu0 %v3330_v55 }
  0x5e   :  { %2511 = vmatprep.subr.bf16.mxu0 %v3338_v59 }
  0x5f   :  { %2538 = vmatpush3.bf16.msra.mxu1 %v3344_v1 }
  0x60   :  { %2539 = vmatprep.subr.bf16.mxu1 %v3117_v37 }
  0x61   :  { %2513 = vmatpush1.bf16.msra.mxu0 %v3351_v4 }
  0x62   :  { %2515 = vmatprep.subr.bf16.mxu0 %v3354_v7 }
  0x63   :  { %2541 = vmatpush3.bf16.msra.mxu1 %v3358_v13 }
  0x64   :  { %2542 = vmatprep.subr.bf16.mxu1 %v3117_v37 }
  0x65   :  { %2517 = vmatpush1.bf16.msra.mxu0 %v3364_v16 }
  0x66   :  { %2519 = vmatprep.subr.bf16.mxu0 %v3367_v18 }
  0x67   :  { %2544 = vmatpush3.bf16.msra.mxu1 %v3371_v23 }
  0x68   :  { %2545 = vmatprep.subr.bf16.mxu1 %v3117_v37 }
  0x69   :  { %2521 = vmatpush1.bf16.msra.mxu0 %v3377_v27 }
  0x6a   :  { %2523 = vmatprep.subr.bf16.mxu0 %v3380_v29 }
  0x6b   :  { %2547 = vmatpush3.bf16.msra.mxu1 %v3384_v35 }
  0x6c   :  { %2548 = vmatprep.subr.bf16.mxu1 %v3117_v37 }
  0x6d   :  { %2525 = vmatpush1.bf16.msra.mxu0 %v3392_v40 }
  0x6e   :  { %2527 = vmatprep.subr.bf16.mxu0 %v3395_v42 }
  0x6f   :  { %2550 = vmatpush3.bf16.msra.mxu1 %v3398_v46 }
  0x70   :  { %2551 = vmatprep.subr.bf16.mxu1 %v3117_v37 }
  0x71   :  { %2529 = vmatpush1.bf16.msra.mxu0 %v3404_v49 }
  0x72   :  { %2555 = vmatprep.subr.bf16.mxu0 %v3209_v9 }
  0x73   :  { %2553 = vmatpush3.bf16.msra.mxu1 %v3408_v50 }
  0x74   :  { %2586 = vmatprep.subr.bf16.mxu1 %v3117_v37 }
 0x109   :  { %v2109_v58 = vpop.f32.mrb[0].mxu1 }
 0x10a   :  { %v3457_v60 = vadd.f32 %v2109_v58, %v158_v57  ;;  %v365_v61 = vpop.f32.mrb[1].mxu1 }
 0x10d   :  { %v2112_v62 = vpop.f32.mrb[2].mxu1 }
 0x10e   :  { %v3459_v63 = vadd.f32 %v2112_v62, %v158_v57  ;;  %v375_v0 = vpop.f32.mrb[3].mxu1 }
 0x10f   :  { %v3461_v2 = vadd.f32 %v375_v0, %v158_v57 }
 0x111   :  { %v2115_v3 = vpop.f32.mrb[4].mxu1 }
 0x112   :  { %v3463_v6 = vadd.f32 %v2115_v3, %v158_v57  ;;  %v385_v8 = vpop.f32.mrb[5].mxu1  ;;  %v366_v3 = vadd.f32 %v365_v61, %v158_v57 }
 0x113   :  { %v3465_v10 = vadd.f32 %v385_v8, %v158_v57 }
 0x119   :  { %v2118_v11 = vpop.f32.mrb[6].mxu1 }
 0x11a   :  { %v3467_v12 = vadd.f32 %v2118_v11, %v158_v57  ;;  %v395_v14 = vpop.f32.mrb[7].mxu1 }
 0x11b   :  { %v3469_v15 = vadd.f32 %v395_v14, %v158_v57 }
 0x127   :  { %v535_v31 = vpop.f32.mrb[0].mxu0 }
 0x128   :  { %v2915_v33 = vadd.f32 %v3474_v28, %v535_v31  ;;  %v537_v34 = vpop.f32.mrb[1].mxu0 }
 0x129   :  { %v606_v36 = vpop.f32.mrb[8].mxu1  ;;  %v2917_v45 = vadd.f32 %v3476_v32, %v537_v34 }
 0x12a   :  { %v1923_v39 = vmul.f32 -1.442695, %v2915_v33  ;;  %v2153_v43 = vpop.f32.mrb[9].mxu1  ;;  %v607_v62 = vadd.f32 %v606_v36, %v3480_v53 }
 0x12b   :  { %v1924_v47 = vmul.f32 -1.442695, %v2917_v45 }
 0x12c   :  { %2970 = vpow2.f32 %v1923_v39 }
 0x12d   :  { %2972 = vpow2.f32 %v1924_v47 }
 0x136   :  { %v2971_v48 = vpop.eup %2970 }
 0x137   :  { %v618_v52 = vadd.f32 1.0, %v2971_v48  ;;  %v2973_v56 = vpop.eup %2972 }
 0x138   :  { %v619_v58 = vadd.f32 1.0, %v2973_v56 }
 0x139   :  { %2974 = vrcp.f32 %v618_v52 }
 0x13a   :  { %2976 = vrcp.f32 %v619_v58 }
 0x143   :  { %v2975_v0 = vpop.eup %2974 }
 0x144   :  { %v624_v8 = vmul.f32 %v2975_v0, %v607_v62  ;;  %v2977_v14 = vpop.eup %2976 }
 0x145   :  { %v627_v17 = vsub.f32 1.0, %v2977_v14  ;;  %v629_v22 = vmul.f32 0.0, %v2977_v14 }
 0x146   :  { %v625_v11 = vadd.f32 %v624_v8, %v366_v3 }
 0x148   :  { %2978 = vtanh.f32 %v625_v11 }
 0x152   :  { %v2979_v20 = vpop.eup %2978 }
 0x153   :  { %v628_v21 = vmul.f32 %v2979_v20, %v627_v17 }
 0x155   :  { %v630_v24 = vadd.f32 %v629_v22, %v628_v21 }
 0x157   :  { %696 = vmatmul.mubr.f32.vlgmr.msra.gmra.mrb[2].mxu0 %v630_v24  ;;  %2187 = vmatmul.mubr.f32.vlgmr.msra.gmra.mrb[10].mxu1 %v630_v24 }
 0x158   :  { %2557 = vmatpush1.bf16.msra.mxu0 %v3274_v26  ;;  %2588 = vmatpush3.bf16.msra.mxu1 %v3293_v38 }
 0x159   :  { %2559 = vmatprep.subr.bf16.mxu0 %v3279_v30  ;;  %2589 = vmatprep.subr.bf16.mxu1 %v3117_v37 }
 0x15a   :  { %857 = vmatprep.mubr.f32.mxu0 %v3116_v5  ;;  %2221 = vmatprep.mubr.msk.f32.mxu1 %vm3118_vm2, %v3116_v5 }
 0x15c   :  { %2561 = vmatpush1.bf16.msra.mxu0 %v3302_v41  ;;  %2591 = vmatpush3.bf16.msra.mxu1 %v3318_v51 }
 0x15d   :  { %2563 = vmatprep.subr.bf16.mxu0 %v3306_v44  ;;  %2592 = vmatprep.subr.bf16.mxu1 %v3117_v37 }
 0x160   :  { %2565 = vmatpush1.bf16.msra.mxu0 %v3330_v55  ;;  %2594 = vmatpush3.bf16.msra.mxu1 %v3344_v1 }
 0x161   :  { %2567 = vmatprep.subr.bf16.mxu0 %v3338_v59  ;;  %2595 = vmatprep.subr.bf16.mxu1 %v3117_v37 }
 0x164   :  { %2569 = vmatpush1.bf16.msra.mxu0 %v3351_v4  ;;  %2597 = vmatpush3.bf16.msra.mxu1 %v3358_v13 }
 0x165   :  { %2571 = vmatprep.subr.bf16.mxu0 %v3354_v7  ;;  %2598 = vmatprep.subr.bf16.mxu1 %v3117_v37 }
 0x168   :  { %2573 = vmatpush1.bf16.msra.mxu0 %v3364_v16  ;;  %2600 = vmatpush3.bf16.msra.mxu1 %v3371_v23 }
 0x169   :  { %2575 = vmatprep.subr.bf16.mxu0 %v3367_v18  ;;  %2601 = vmatprep.subr.bf16.mxu1 %v3117_v37 }
 0x16c   :  { %2577 = vmatpush1.bf16.msra.mxu0 %v3377_v27  ;;  %2603 = vmatpush3.bf16.msra.mxu1 %v3384_v35 }
 0x16d   :  { %2579 = vmatprep.subr.bf16.mxu0 %v3380_v29  ;;  %2604 = vmatprep.subr.bf16.mxu1 %v3117_v37 }
 0x170   :  { %2581 = vmatpush1.bf16.msra.mxu0 %v3392_v40  ;;  %2606 = vmatpush3.bf16.msra.mxu1 %v3398_v46 }
 0x171   :  { %2583 = vmatprep.subr.bf16.mxu0 %v3395_v42  ;;  %2607 = vmatprep.subr.bf16.mxu1 %v3117_v37 }
 0x174   :  { %2585 = vmatpush1.bf16.msra.mxu0 %v3404_v49  ;;  %2609 = vmatpush3.bf16.msra.mxu1 %v3408_v50 }
 0x175   :  { %2611 = vmatprep.subr.bf16.mxu0 %v3209_v9  ;;  %2642 = vmatprep.subr.bf16.mxu1 %v3117_v37 }
 0x22a   :  { %v697_v54 = vpop.f32.mrb[2].mxu0  ;;  %v768_v57 = vpop.f32.mrb[10].mxu1 }
 0x22b   :  { %v2919_v61 = vadd.f32 %v3474_v28, %v697_v54  ;;  %v699_v19 = vpop.f32.mrb[3].mxu0  ;;  %v2188_v25 = vpop.f32.mrb[11].mxu1  ;;  %v769_v47 = vadd.f32 %v768_v57, %v3480_v53 }
 0x22c   :  { %v2921_v33 = vadd.f32 %v3476_v32, %v699_v19 }
 0x22d   :  { %v1925_v31 = vmul.f32 -1.442695, %v2919_v61 }
 0x22e   :  { %v1926_v34 = vmul.f32 -1.442695, %v2921_v33 }
 0x22f   :  { %2980 = vpow2.f32 %v1925_v31 }
 0x230   :  { %2982 = vpow2.f32 %v1926_v34 }
 0x239   :  { %v2981_v36 = vpop.eup %2980 }
 0x23a   :  { %v780_v39 = vadd.f32 1.0, %v2981_v36  ;;  %v2983_v43 = vpop.eup %2982 }
 0x23b   :  { %v781_v45 = vadd.f32 1.0, %v2983_v43 }
 0x23c   :  { %2984 = vrcp.f32 %v780_v39 }
 0x23d   :  { %2986 = vrcp.f32 %v781_v45 }
 0x246   :  { %v2985_v48 = vpop.eup %2984 }
 0x247   :  { %v786_v52 = vmul.f32 %v2985_v48, %v769_v47  ;;  %v2987_v58 = vpop.eup %2986 }
 0x248   :  { %v789_v62 = vsub.f32 1.0, %v2987_v58  ;;  %v791_v8 = vmul.f32 %v2987_v58, %v630_v24 }
 0x249   :  { %v787_v56 = vadd.f32 %v786_v52, %v3457_v60 }
 0x24b   :  { %2988 = vtanh.f32 %v787_v56 }
 0x255   :  { %v2989_v0 = vpop.eup %2988 }
 0x256   :  { %v790_v3 = vmul.f32 %v2989_v0, %v789_v62 }
 0x258   :  { %v792_v11 = vadd.f32 %v791_v8, %v790_v3 }
 0x25a   :  { %858 = vmatmul.mubr.f32.vlgmr.msra.gmra.mrb[4].mxu0 %v792_v11  ;;  %2222 = vmatmul.mubr.f32.vlgmr.msra.gmra.mrb[12].mxu1 %v792_v11 }
 0x25b   :  { %2613 = vmatpush1.bf16.msra.mxu0 %v3274_v26  ;;  %2644 = vmatpush3.bf16.msra.mxu1 %v3293_v38 }
 0x25c   :  { %2615 = vmatprep.subr.bf16.mxu0 %v3279_v30  ;;  %2645 = vmatprep.subr.bf16.mxu1 %v3117_v37 }
 0x25d   :  { %1019 = vmatprep.mubr.f32.mxu0 %v3116_v5  ;;  %2256 = vmatprep.mubr.msk.f32.mxu1 %vm3118_vm2, %v3116_v5 }
 0x25f   :  { %2617 = vmatpush1.bf16.msra.mxu0 %v3302_v41  ;;  %2647 = vmatpush3.bf16.msra.mxu1 %v3318_v51 }
 0x260   :  { %2619 = vmatprep.subr.bf16.mxu0 %v3306_v44  ;;  %2648 = vmatprep.subr.bf16.mxu1 %v3117_v37 }
 0x263   :  { %2621 = vmatpush1.bf16.msra.mxu0 %v3330_v55  ;;  %2650 = vmatpush3.bf16.msra.mxu1 %v3344_v1 }
 0x264   :  { %2623 = vmatprep.subr.bf16.mxu0 %v3338_v59  ;;  %2651 = vmatprep.subr.bf16.mxu1 %v3117_v37 }
 0x267   :  { %2625 = vmatpush1.bf16.msra.mxu0 %v3351_v4  ;;  %2653 = vmatpush3.bf16.msra.mxu1 %v3358_v13 }
 0x268   :  { %2627 = vmatprep.subr.bf16.mxu0 %v3354_v7  ;;  %2654 = vmatprep.subr.bf16.mxu1 %v3117_v37 }
 0x26b   :  { %2629 = vmatpush1.bf16.msra.mxu0 %v3364_v16  ;;  %2656 = vmatpush3.bf16.msra.mxu1 %v3371_v23 }
 0x26c   :  { %2631 = vmatprep.subr.bf16.mxu0 %v3367_v18  ;;  %2657 = vmatprep.subr.bf16.mxu1 %v3117_v37 }
 0x26f   :  { %2633 = vmatpush1.bf16.msra.mxu0 %v3377_v27  ;;  %2659 = vmatpush3.bf16.msra.mxu1 %v3384_v35 }
 0x270   :  { %2635 = vmatprep.subr.bf16.mxu0 %v3380_v29  ;;  %2660 = vmatprep.subr.bf16.mxu1 %v3117_v37 }
 0x273   :  { %2637 = vmatpush1.bf16.msra.mxu0 %v3392_v40  ;;  %2662 = vmatpush3.bf16.msra.mxu1 %v3398_v46 }
 0x274   :  { %2639 = vmatprep.subr.bf16.mxu0 %v3395_v42  ;;  %2663 = vmatprep.subr.bf16.mxu1 %v3117_v37 }
 0x277   :  { %2641 = vmatpush1.bf16.msra.mxu0 %v3404_v49  ;;  %2665 = vmatpush3.bf16.msra.mxu1 %v3408_v50 }
 0x278   :  { %2667 = vmatprep.subr.bf16.mxu0 %v3209_v9  ;;  %2698 = vmatprep.subr.bf16.mxu1 %v3117_v37 }
 0x32d   :  { %v859_v60 = vpop.f32.mrb[4].mxu0  ;;  %v930_v14 = vpop.f32.mrb[12].mxu1 }
 0x32e   :  { %v2923_v17 = vadd.f32 %v3474_v28, %v859_v60  ;;  %v861_v20 = vpop.f32.mrb[5].mxu0  ;;  %v2223_v21 = vpop.f32.mrb[13].mxu1  ;;  %v931_v31 = vadd.f32 %v930_v14, %v3480_v53 }
 0x32f   :  { %v2925_v24 = vadd.f32 %v3476_v32, %v861_v20 }
 0x330   :  { %v1927_v22 = vmul.f32 -1.442695, %v2923_v17 }
 0x331   :  { %v1928_v54 = vmul.f32 -1.442695, %v2925_v24 }
 0x332   :  { %2990 = vpow2.f32 %v1927_v22 }
 0x333   :  { %2992 = vpow2.f32 %v1928_v54 }
 0x33c   :  { %v2991_v57 = vpop.eup %2990 }
 0x33d   :  { %v942_v61 = vadd.f32 1.0, %v2991_v57  ;;  %v2993_v19 = vpop.eup %2992 }
 0x33e   :  { %v943_v25 = vadd.f32 1.0, %v2993_v19 }
 0x33f   :  { %2994 = vrcp.f32 %v942_v61 }
 0x340   :  { %2996 = vrcp.f32 %v943_v25 }
 0x349   :  { %v2995_v33 = vpop.eup %2994 }
 0x34a   :  { %v948_v34 = vmul.f32 %v2995_v33, %v931_v31  ;;  %v2997_v39 = vpop.eup %2996 }
 0x34b   :  { %v951_v43 = vsub.f32 1.0, %v2997_v39  ;;  %v953_v48 = vmul.f32 %v2997_v39, %v792_v11 }
 0x34c   :  { %v949_v36 = vadd.f32 %v948_v34, %v3461_v2 }
 0x34e   :  { %2998 = vtanh.f32 %v949_v36 }
 0x358   :  { %v2999_v45 = vpop.eup %2998 }
 0x359   :  { %v952_v47 = vmul.f32 %v2999_v45, %v951_v43 }
 0x35b   :  { %v954_v52 = vadd.f32 %v953_v48, %v952_v47 }
 0x35d   :  { %1020 = vmatmul.mubr.f32.vlgmr.msra.gmra.mrb[6].mxu0 %v954_v52  ;;  %2257 = vmatmul.mubr.f32.vlgmr.msra.gmra.mrb[14].mxu1 %v954_v52 }
 0x35e   :  { %2669 = vmatpush1.bf16.msra.mxu0 %v3274_v26  ;;  %2700 = vmatpush3.bf16.msra.mxu1 %v3293_v38 }
 0x35f   :  { %2671 = vmatprep.subr.bf16.mxu0 %v3279_v30  ;;  %2701 = vmatprep.subr.bf16.mxu1 %v3117_v37 }
 0x360   :  { %1181 = vmatprep.mubr.f32.mxu0 %v3116_v5  ;;  %2291 = vmatprep.mubr.msk.f32.mxu1 %vm3118_vm2, %v3116_v5 }
 0x362   :  { %2673 = vmatpush1.bf16.msra.mxu0 %v3302_v41  ;;  %2703 = vmatpush3.bf16.msra.mxu1 %v3318_v51 }
 0x363   :  { %2675 = vmatprep.subr.bf16.mxu0 %v3306_v44  ;;  %2704 = vmatprep.subr.bf16.mxu1 %v3117_v37 }
 0x366   :  { %2677 = vmatpush1.bf16.msra.mxu0 %v3330_v55  ;;  %2706 = vmatpush3.bf16.msra.mxu1 %v3344_v1 }
 0x367   :  { %2679 = vmatprep.subr.bf16.mxu0 %v3338_v59  ;;  %2707 = vmatprep.subr.bf16.mxu1 %v3117_v37 }
 0x36a   :  { %2681 = vmatpush1.bf16.msra.mxu0 %v3351_v4  ;;  %2709 = vmatpush3.bf16.msra.mxu1 %v3358_v13 }
 0x36b   :  { %2683 = vmatprep.subr.bf16.mxu0 %v3354_v7  ;;  %2710 = vmatprep.subr.bf16.mxu1 %v3117_v37 }
 0x36e   :  { %2685 = vmatpush1.bf16.msra.mxu0 %v3364_v16  ;;  %2712 = vmatpush3.bf16.msra.mxu1 %v3371_v23 }
 0x36f   :  { %2687 = vmatprep.subr.bf16.mxu0 %v3367_v18  ;;  %2713 = vmatprep.subr.bf16.mxu1 %v3117_v37 }
 0x372   :  { %2689 = vmatpush1.bf16.msra.mxu0 %v3377_v27  ;;  %2715 = vmatpush3.bf16.msra.mxu1 %v3384_v35 }
 0x373   :  { %2691 = vmatprep.subr.bf16.mxu0 %v3380_v29  ;;  %2716 = vmatprep.subr.bf16.mxu1 %v3117_v37 }
 0x376   :  { %2693 = vmatpush1.bf16.msra.mxu0 %v3392_v40  ;;  %2718 = vmatpush3.bf16.msra.mxu1 %v3398_v46 }
 0x377   :  { %2695 = vmatprep.subr.bf16.mxu0 %v3395_v42  ;;  %2719 = vmatprep.subr.bf16.mxu1 %v3117_v37 }
 0x37a   :  { %2697 = vmatpush1.bf16.msra.mxu0 %v3404_v49  ;;  %2721 = vmatpush3.bf16.msra.mxu1 %v3408_v50 }
 0x37b   :  { %2723 = vmatprep.subr.bf16.mxu0 %v3209_v9  ;;  %2754 = vmatprep.subr.bf16.mxu1 %v3117_v37 }
 0x430   :  { %v1021_v2 = vpop.f32.mrb[6].mxu0  ;;  %v1092_v56 = vpop.f32.mrb[14].mxu1 }
 0x431   :  { %v2927_v58 = vadd.f32 %v3474_v28, %v1021_v2  ;;  %v1023_v62 = vpop.f32.mrb[7].mxu0  ;;  %v2258_v0 = vpop.f32.mrb[15].mxu1  ;;  %v1093_v21 = vadd.f32 %v1092_v56, %v3480_v53 }
 0x432   :  { %v2929_v8 = vadd.f32 %v3476_v32, %v1023_v62 }
 0x433   :  { %v1929_v3 = vmul.f32 -1.442695, %v2927_v58 }
 0x434   :  { %v1930_v11 = vmul.f32 -1.442695, %v2929_v8 }
 0x435   :  { %3000 = vpow2.f32 %v1929_v3 }
 0x436   :  { %3002 = vpow2.f32 %v1930_v11 }
 0x43f   :  { %v3001_v60 = vpop.eup %3000 }
 0x440   :  { %v1104_v14 = vadd.f32 1.0, %v3001_v60  ;;  %v3003_v17 = vpop.eup %3002 }
 0x441   :  { %v1105_v20 = vadd.f32 1.0, %v3003_v17 }
 0x442   :  { %3004 = vrcp.f32 %v1104_v14 }
 0x443   :  { %3006 = vrcp.f32 %v1105_v20 }
 0x44c   :  { %v3005_v22 = vpop.eup %3004 }
 0x44d   :  { %v1110_v24 = vmul.f32 %v3005_v22, %v1093_v21  ;;  %v3007_v57 = vpop.eup %3006 }
 0x44e   :  { %v1113_v61 = vsub.f32 1.0, %v3007_v57  ;;  %v1115_v31 = vmul.f32 %v3007_v57, %v954_v52 }
 0x44f   :  { %v1111_v54 = vadd.f32 %v1110_v24, %v3459_v63 }
 0x451   :  { %3008 = vtanh.f32 %v1111_v54 }
 0x45b   :  { %v3009_v19 = vpop.eup %3008 }
 0x45c   :  { %v1114_v25 = vmul.f32 %v3009_v19, %v1113_v61 }
 0x45e   :  { %v1116_v33 = vadd.f32 %v1115_v31, %v1114_v25 }
 0x460   :  { %1182 = vmatmul.mubr.f32.vlgmr.msra.gmra.mrb[8].mxu0 %v1116_v33  ;;  %2292 = vmatmul.mubr.f32.vlgmr.msra.gmra.mrb[16].mxu1 %v1116_v33 }
 0x461   :  { %2725 = vmatpush1.bf16.msra.mxu0 %v3274_v26  ;;  %2756 = vmatpush3.bf16.msra.mxu1 %v3293_v38 }
 0x462   :  { %2727 = vmatprep.subr.bf16.mxu0 %v3279_v30  ;;  %2757 = vmatprep.subr.bf16.mxu1 %v3117_v37 }
 0x463   :  { %1343 = vmatprep.mubr.f32.mxu0 %v3116_v5  ;;  %2326 = vmatprep.mubr.msk.f32.mxu1 %vm3118_vm2, %v3116_v5 }
 0x465   :  { %2729 = vmatpush1.bf16.msra.mxu0 %v3302_v41  ;;  %2759 = vmatpush3.bf16.msra.mxu1 %v3318_v51 }
 0x466   :  { %2731 = vmatprep.subr.bf16.mxu0 %v3306_v44  ;;  %2760 = vmatprep.subr.bf16.mxu1 %v3117_v37 }
 0x469   :  { %2733 = vmatpush1.bf16.msra.mxu0 %v3330_v55  ;;  %2762 = vmatpush3.bf16.msra.mxu1 %v3344_v1 }
 0x46a   :  { %2735 = vmatprep.subr.bf16.mxu0 %v3338_v59  ;;  %2763 = vmatprep.subr.bf16.mxu1 %v3117_v37 }
 0x46d   :  { %2737 = vmatpush1.bf16.msra.mxu0 %v3351_v4  ;;  %2765 = vmatpush3.bf16.msra.mxu1 %v3358_v13 }
 0x46e   :  { %2739 = vmatprep.subr.bf16.mxu0 %v3354_v7  ;;  %2766 = vmatprep.subr.bf16.mxu1 %v3117_v37 }
 0x471   :  { %2741 = vmatpush1.bf16.msra.mxu0 %v3364_v16  ;;  %2768 = vmatpush3.bf16.msra.mxu1 %v3371_v23 }
 0x472   :  { %2743 = vmatprep.subr.bf16.mxu0 %v3367_v18  ;;  %2769 = vmatprep.subr.bf16.mxu1 %v3117_v37 }
 0x475   :  { %2745 = vmatpush1.bf16.msra.mxu0 %v3377_v27  ;;  %2771 = vmatpush3.bf16.msra.mxu1 %v3384_v35 }
 0x476   :  { %2747 = vmatprep.subr.bf16.mxu0 %v3380_v29  ;;  %2772 = vmatprep.subr.bf16.mxu1 %v3117_v37 }
 0x479   :  { %2749 = vmatpush1.bf16.msra.mxu0 %v3392_v40  ;;  %2774 = vmatpush3.bf16.msra.mxu1 %v3398_v46 }
 0x47a   :  { %2751 = vmatprep.subr.bf16.mxu0 %v3395_v42  ;;  %2775 = vmatprep.subr.bf16.mxu1 %v3117_v37 }
 0x47d   :  { %2753 = vmatpush1.bf16.msra.mxu0 %v3404_v49  ;;  %2777 = vmatpush3.bf16.msra.mxu1 %v3408_v50 }
 0x47e   :  { %2779 = vmatprep.subr.bf16.mxu0 %v3209_v9  ;;  %2810 = vmatprep.subr.bf16.mxu1 %v3117_v37 }
 0x533   :  { %v1183_v63 = vpop.f32.mrb[8].mxu0  ;;  %v1254_v34 = vpop.f32.mrb[16].mxu1 }
 0x534   :  { %v2931_v36 = vadd.f32 %v3474_v28, %v1183_v63  ;;  %v1185_v39 = vpop.f32.mrb[9].mxu0  ;;  %v2293_v43 = vpop.f32.mrb[17].mxu1  ;;  %v1255_v62 = vadd.f32 %v1254_v34, %v3480_v53 }
 0x535   :  { %v2933_v47 = vadd.f32 %v3476_v32, %v1185_v39 }
 0x536   :  { %v1931_v45 = vmul.f32 -1.442695, %v2931_v36 }
 0x537   :  { %v1932_v48 = vmul.f32 -1.442695, %v2933_v47 }
 0x538   :  { %3010 = vpow2.f32 %v1931_v45 }
 0x539   :  { %3012 = vpow2.f32 %v1932_v48 }
 0x542   :  { %v3011_v52 = vpop.eup %3010 }
 0x543   :  { %v1266_v2 = vadd.f32 1.0, %v3011_v52  ;;  %v3013_v56 = vpop.eup %3012 }
 0x544   :  { %v1267_v58 = vadd.f32 1.0, %v3013_v56 }
 0x545   :  { %3014 = vrcp.f32 %v1266_v2 }
 0x546   :  { %3016 = vrcp.f32 %v1267_v58  ;;  %v1767_v58 = vld [vmem:[%s3803_s6 + $0x10] sm:$0xff] }
 0x54f   :  { %v3015_v0 = vpop.eup %3014 }
 0x550   :  { %v1272_v3 = vmul.f32 %v3015_v0, %v1255_v62  ;;  %v3017_v11 = vpop.eup %3016  ;;  %v1769_v0 = vld [vmem:[%s3803_s6 + $0x20] sm:$0xff] }
 0x551   :  { %v1275_v60 = vsub.f32 1.0, %v3017_v11  ;;  %v1277_v20 = vmul.f32 %v3017_v11, %v1116_v33  ;;  %v1771_v11 = vld [vmem:[%s3803_s6 + $0x30] sm:$0xff] }
 0x552   :  { %v1273_v8 = vadd.f32 %v1272_v3, %v3465_v10  ;;  %v1770_v3 = vld [vmem:[%s3803_s6 + $0x28] sm:$0xff] }
 0x554   :  { %3018 = vtanh.f32 %v1273_v8  ;;  %v2897_v8 = vpack.c.bf16 %v1770_v3, %v1769_v0 }
 0x55e   :  { %v3019_v14 = vpop.eup %3018 }
 0x55f   :  { %v1276_v17 = vmul.f32 %v3019_v14, %v1275_v60  ;;  %v1772_v60 = vld [vmem:[%s3803_s6 + $0x38] sm:$0xff] }
 0x560   :  { %v2900_v14 = vpack.c.bf16 %v1772_v60, %v1771_v11 }
 0x561   :  { %v1278_v21 = vadd.f32 %v1277_v20, %v1276_v17  ;;  %v1773_v17 = vld [vmem:[%s3803_s6 + $0x40] sm:$0xff]  ;;  %v1774_v20 = vld [vmem:[%s3803_s6 + $0x48] sm:$0xff] }
 0x563   :  { %1344 = vmatmul.mubr.f32.vlgmr.msra.gmra.mrb[10].mxu0 %v1278_v21  ;;  %2327 = vmatmul.mubr.f32.vlgmr.msra.gmra.mrb[18].mxu1 %v1278_v21 }
 0x564   :  { %2781 = vmatpush1.bf16.msra.mxu0 %v3274_v26  ;;  %2812 = vmatpush3.bf16.msra.mxu1 %v3293_v38 }
 0x565   :  { %2783 = vmatprep.subr.bf16.mxu0 %v3279_v30  ;;  %2813 = vmatprep.subr.bf16.mxu1 %v3117_v37 }
 0x566   :  { %1505 = vmatprep.mubr.f32.mxu0 %v3116_v5  ;;  %2361 = vmatprep.mubr.msk.f32.mxu1 %vm3118_vm2, %v3116_v5 }
 0x568   :  { %2785 = vmatpush1.bf16.msra.mxu0 %v3302_v41  ;;  %2815 = vmatpush3.bf16.msra.mxu1 %v3318_v51 }
 0x569   :  { %2787 = vmatprep.subr.bf16.mxu0 %v3306_v44  ;;  %2816 = vmatprep.subr.bf16.mxu1 %v3117_v37 }
 0x56c   :  { %2789 = vmatpush1.bf16.msra.mxu0 %v3330_v55  ;;  %2818 = vmatpush3.bf16.msra.mxu1 %v3344_v1 }
 0x56d   :  { %2791 = vmatprep.subr.bf16.mxu0 %v3338_v59  ;;  %2819 = vmatprep.subr.bf16.mxu1 %v3117_v37 }
 0x570   :  { %2793 = vmatpush1.bf16.msra.mxu0 %v3351_v4  ;;  %2821 = vmatpush3.bf16.msra.mxu1 %v3358_v13 }
 0x571   :  { %2795 = vmatprep.subr.bf16.mxu0 %v3354_v7  ;;  %2822 = vmatprep.subr.bf16.mxu1 %v3117_v37 }
 0x574   :  { %2797 = vmatpush1.bf16.msra.mxu0 %v3364_v16  ;;  %2824 = vmatpush3.bf16.msra.mxu1 %v3371_v23 }
 0x575   :  { %2799 = vmatprep.subr.bf16.mxu0 %v3367_v18  ;;  %2825 = vmatprep.subr.bf16.mxu1 %v3117_v37 }
 0x578   :  { %2801 = vmatpush1.bf16.msra.mxu0 %v3377_v27  ;;  %2827 = vmatpush3.bf16.msra.mxu1 %v3384_v35 }
 0x579   :  { %2803 = vmatprep.subr.bf16.mxu0 %v3380_v29  ;;  %2828 = vmatprep.subr.bf16.mxu1 %v3117_v37 }
 0x57c   :  { %2805 = vmatpush1.bf16.msra.mxu0 %v3392_v40  ;;  %2830 = vmatpush3.bf16.msra.mxu1 %v3398_v46 }
 0x57d   :  { %2807 = vmatprep.subr.bf16.mxu0 %v3395_v42  ;;  %2831 = vmatprep.subr.bf16.mxu1 %v3117_v37 }
 0x580   :  { %2809 = vmatpush1.bf16.msra.mxu0 %v3404_v49  ;;  %2833 = vmatpush3.bf16.msra.mxu1 %v3408_v50 }
 0x581   :  { %2835 = vmatprep.subr.bf16.mxu0 %v3209_v9  ;;  %2866 = vmatprep.subr.bf16.mxu1 %v3117_v37 }
 0x636   :  { %v1345_v10 = vpop.f32.mrb[10].mxu0  ;;  %v1416_v22 = vpop.f32.mrb[18].mxu1 }
 0x637   :  { %v2935_v24 = vadd.f32 %v3474_v28, %v1345_v10  ;;  %v1347_v54 = vpop.f32.mrb[11].mxu0  ;;  %v2328_v57 = vpop.f32.mrb[19].mxu1  ;;  %v1417_v9 = vadd.f32 %v1416_v22, %v3480_v53  ;;  %v1775_v10 = vld [vmem:[%s3803_s6 + $0x50] sm:$0xff]  ;;  %v1776_v22 = vld [vmem:[%s3803_s6 + $0x58] sm:$0xff] }
 0x638   :  { %v2937_v19 = vadd.f32 %v3476_v32, %v1347_v54  ;;  %v1777_v54 = vld [vmem:[%s3803_s6 + $0x60] sm:$0xff]  ;;  %v1778_v57 = vld [vmem:[%s3803_s6 + $0x68] sm:$0xff] }
 0x639   :  { %v1933_v61 = vmul.f32 -1.442695, %v2935_v24  ;;  %v2906_v24 = vpack.c.bf16 %v1776_v22, %v1775_v10 }
 0x63a   :  { %v1934_v25 = vmul.f32 -1.442695, %v2937_v19  ;;  %v1779_v19 = vld [vmem:[%s3803_s6 + $0x70] sm:$0xff] }
 0x63b   :  { %3020 = vpow2.f32 %v1933_v61  ;;  %v2909_v61 = vpack.c.bf16 %v1778_v57, %v1777_v54 }
 0x63c   :  { %3022 = vpow2.f32 %v1934_v25  ;;  %v1780_v25 = vld [vmem:[%s3803_s6 + $0x78] sm:$0xff] }
 0x645   :  { %v3021_v31 = vpop.eup %3020 }
 0x646   :  { %v1428_v33 = vadd.f32 1.0, %v3021_v31  ;;  %v3023_v63 = vpop.eup %3022  ;;  %v2912_v31 = vpack.c.bf16 %v1780_v25, %v1779_v19 }
 0x647   :  { %v1429_v34 = vadd.f32 1.0, %v3023_v63 }
 0x648   :  { %3024 = vrcp.f32 %v1428_v33 }
 0x649   :  { %3026 = vrcp.f32 %v1429_v34 }
 0x652   :  { %v3025_v36 = vpop.eup %3024 }
 0x653   :  { %v1434_v39 = vmul.f32 %v3025_v36, %v1417_v9  ;;  %v3027_v45 = vpop.eup %3026 }
 0x654   :  { %v1437_v47 = vsub.f32 1.0, %v3027_v45  ;;  %v1439_v2 = vmul.f32 %v3027_v45, %v1278_v21  ;;  %v2903_v21 = vpack.c.bf16 %v1774_v20, %v1773_v17 }
 0x655   :  { %v1435_v43 = vadd.f32 %v1434_v39, %v3463_v6  ;;  %v1766_v6 = vld [vmem:[%s3803_s6 + $0x8] sm:$0xff] }
 0x657   :  { %3028 = vtanh.f32 %v1435_v43 }
 0x661   :  { %v3029_v48 = vpop.eup %3028 }
 0x662   :  { %v1438_v52 = vmul.f32 %v3029_v48, %v1437_v47 }
 0x664   :  { %v1440_v56 = vadd.f32 %v1439_v2, %v1438_v52 }
 0x666   :  { %1506 = vmatmul.mubr.f32.vlgmr.msra.gmra.mrb[12].mxu0 %v1440_v56  ;;  %2362 = vmatmul.mubr.f32.vlgmr.msra.gmra.mrb[20].mxu1 %v1440_v56 }
 0x667   :  { %2837 = vmatpush1.bf16.msra.mxu0 %v3274_v26  ;;  %2868 = vmatpush3.bf16.msra.mxu1 %v3293_v38 }
 0x668   :  { %2839 = vmatprep.subr.bf16.mxu0 %v3279_v30  ;;  %2869 = vmatprep.subr.bf16.mxu1 %v3117_v37 }
 0x669   :  { %1667 = vmatprep.mubr.f32.mxu0 %v3116_v5  ;;  %2396 = vmatprep.mubr.msk.f32.mxu1 %vm3118_vm2, %v3116_v5 }
 0x66b   :  { %2841 = vmatpush1.bf16.msra.mxu0 %v3302_v41  ;;  %2871 = vmatpush3.bf16.msra.mxu1 %v3318_v51 }
 0x66c   :  { %2843 = vmatprep.subr.bf16.mxu0 %v3306_v44  ;;  %2872 = vmatprep.subr.bf16.mxu1 %v3117_v37 }
 0x66f   :  { %2845 = vmatpush1.bf16.msra.mxu0 %v3330_v55  ;;  %2874 = vmatpush3.bf16.msra.mxu1 %v3344_v1 }
 0x670   :  { %2847 = vmatprep.subr.bf16.mxu0 %v3338_v59  ;;  %2875 = vmatprep.subr.bf16.mxu1 %v3117_v37 }
 0x673   :  { %2849 = vmatpush1.bf16.msra.mxu0 %v3351_v4  ;;  %2877 = vmatpush3.bf16.msra.mxu1 %v3358_v13 }
 0x674   :  { %2851 = vmatprep.subr.bf16.mxu0 %v3354_v7  ;;  %2878 = vmatprep.subr.bf16.mxu1 %v3117_v37 }
 0x677   :  { %2853 = vmatpush1.bf16.msra.mxu0 %v3364_v16  ;;  %2880 = vmatpush3.bf16.msra.mxu1 %v3371_v23 }
 0x678   :  { %2855 = vmatprep.subr.bf16.mxu0 %v3367_v18  ;;  %2881 = vmatprep.subr.bf16.mxu1 %v3117_v37 }
 0x67b   :  { %2857 = vmatpush1.bf16.msra.mxu0 %v3377_v27  ;;  %2883 = vmatpush3.bf16.msra.mxu1 %v3384_v35 }
 0x67c   :  { %2859 = vmatprep.subr.bf16.mxu0 %v3380_v29  ;;  %2884 = vmatprep.subr.bf16.mxu1 %v3117_v37 }
 0x67f   :  { %2861 = vmatpush1.bf16.msra.mxu0 %v3392_v40  ;;  %2886 = vmatpush3.bf16.msra.mxu1 %v3398_v46 }
 0x680   :  { %2863 = vmatprep.subr.bf16.mxu0 %v3395_v42  ;;  %2887 = vmatprep.subr.bf16.mxu1 %v3117_v37 }
 0x683   :  { %2865 = vmatpush1.bf16.msra.mxu0 %v3404_v49  ;;  %2889 = vmatpush3.bf16.msra.mxu1 %v3408_v50  ;;  %v1765_v50 = vld [vmem:[%s3803_s6] sm:$0xff] }
 0x684   :  { %2890 = vmatprep.subr.bf16.mxu0 %v3117_v37 }
 0x739   :  { %v1507_v26 = vpop.f32.mrb[12].mxu0  ;;  %v1578_v30 = vpop.f32.mrb[20].mxu1 }
 0x73a   :  { %v2939_v38 = vadd.f32 %v3474_v28, %v1507_v26  ;;  %v1509_v41 = vpop.f32.mrb[13].mxu0  ;;  %v2363_v44 = vpop.f32.mrb[21].mxu1  ;;  %v1579_v16 = vadd.f32 %v1578_v30, %v3480_v53 }
 0x73b   :  { %v2941_v55 = vadd.f32 %v3476_v32, %v1509_v41 }
 0x73c   :  { %v1935_v51 = vmul.f32 -1.442695, %v2939_v38 }
 0x73d   :  { %v1936_v59 = vmul.f32 -1.442695, %v2941_v55  ;;  %v1939_v55 = vld [vmem:[%s3804_s7] ss:$0 sm:$0xff] }
 0x73e   :  { %3030 = vpow2.f32 %v1935_v51 }
 0x73f   :  { %3032 = vpow2.f32 %v1936_v59 }
 0x748   :  { %v3031_v1 = vpop.eup %3030 }
 0x749   :  { %v1590_v4 = vadd.f32 1.0, %v3031_v1  ;;  %v3033_v7 = vpop.eup %3032 }
 0x74a   :  { %v1591_v13 = vadd.f32 1.0, %v3033_v7 }
 0x74b   :  { %3034 = vrcp.f32 %v1590_v4 }
 0x74c   :  { %3036 = vrcp.f32 %v1591_v13 }
 0x755   :  { %v3035_v18 = vpop.eup %3034 }
 0x756   :  { %v1596_v23 = vmul.f32 %v3035_v18, %v1579_v16  ;;  %v3037_v29 = vpop.eup %3036 }
 0x757   :  { %v1599_v35 = vsub.f32 1.0, %v3037_v29  ;;  %v1601_v46 = vmul.f32 %v3037_v29, %v1440_v56 }
 0x758   :  { %v1597_v27 = vadd.f32 %v1596_v23, %v3469_v15  ;;  %v2891_v15 = vpack.c.bf16 %v1766_v6, %v1765_v50 }
 0x75a   :  { %3038 = vtanh.f32 %v1597_v27 }
 0x764   :  { %v3039_v40 = vpop.eup %3038 }
 0x765   :  { %v1600_v42 = vmul.f32 %v3039_v40, %v1599_v35 }
 0x767   :  { %v3716_v49 = vadd.f32 %v1601_v46, %v1600_v42 }
 0x769   :  { %1668 = vmatmul.mubr.f32.vlgmr.msra.gmra.mrb[14].mxu0 %v3716_v49  ;;  %2397 = vmatmul.mubr.f32.vlgmr.msra.gmra.mrb[22].mxu1 %v3716_v49 }
 0x76a   :  { %2431 = vmatprep.mubr.msk.f32.mxu0 %vm3118_vm2, %v3116_v5  ;;  %2892 = vmatpush3.bf16.msra.mxu0 %v2891_v15  ;;  %v1768_v5 = vld [vmem:[%s3803_s6 + $0x18] sm:$0xff] }
 0x76b   :  { %2893 = vmatprep.subr.bf16.mxu0 %v3117_v37  ;;  %v2894_v62 = vpack.c.bf16 %v1768_v5, %v1767_v58 }
 0x76e   :  { %2895 = vmatpush3.bf16.msra.mxu0 %v2894_v62 }
 0x76f   :  { %2896 = vmatprep.subr.bf16.mxu0 %v3117_v37 }
 0x772   :  { %2898 = vmatpush3.bf16.msra.mxu0 %v2897_v8 }
 0x773   :  { %2899 = vmatprep.subr.bf16.mxu0 %v3117_v37 }
 0x776   :  { %2901 = vmatpush3.bf16.msra.mxu0 %v2900_v14 }
 0x777   :  { %2902 = vmatprep.subr.bf16.mxu0 %v3117_v37 }
 0x77a   :  { %2904 = vmatpush3.bf16.msra.mxu0 %v2903_v21 }
 0x77b   :  { %2905 = vmatprep.subr.bf16.mxu0 %v3117_v37 }
 0x77e   :  { %2907 = vmatpush3.bf16.msra.mxu0 %v2906_v24 }
 0x77f   :  { %2908 = vmatprep.subr.bf16.mxu0 %v3117_v37 }
 0x782   :  { %2910 = vmatpush3.bf16.msra.mxu0 %v2909_v61 }
 0x783   :  { %2911 = vmatprep.subr.bf16.mxu0 %v3117_v37 }
 0x786   :  { %2913 = vmatpush3.bf16.msra.mxu0 %v2912_v31 }
 0x83c   :  { %v1669_v33 = vpop.f32.mrb[14].mxu0  ;;  %v1740_v63 = vpop.f32.mrb[22].mxu1 }
 0x83d   :  { %v2943_v34 = vadd.f32 %v3474_v28, %v1669_v33  ;;  %v1671_v9 = vpop.f32.mrb[15].mxu0  ;;  %v2398_v36 = vpop.f32.mrb[23].mxu1  ;;  %v1741_v37 = vadd.f32 %v1740_v63, %v3480_v53 }
 0x83e   :  { %v2945_v43 = vadd.f32 %v3476_v32, %v1671_v9 }
 0x83f   :  { %v1937_v39 = vmul.f32 -1.442695, %v2943_v34 }
 0x840   :  { %v1938_v45 = vmul.f32 -1.442695, %v2945_v43 }
 0x841   :  { %3040 = vpow2.f32 %v1937_v39 }
 0x842   :  { %3042 = vpow2.f32 %v1938_v45 }
 0x84b   :  { %v3041_v47 = vpop.eup %3040 }
 0x84c   :  { %v1752_v48 = vadd.f32 1.0, %v3041_v47  ;;  %v3043_v52 = vpop.eup %3042 }
 0x84d   :  { %v1753_v2 = vadd.f32 1.0, %v3043_v52 }
 0x84e   :  { %3044 = vrcp.f32 %v1752_v48 }
 0x84f   :  { %3046 = vrcp.f32 %v1753_v2 }
 0x858   :  { %v3045_v56 = vpop.eup %3044 }
 0x859   :  { %v1758_v26 = vmul.f32 %v3045_v56, %v1741_v37  ;;  %v3047_v30 = vpop.eup %3046 }
 0x85a   :  { %v1761_v38 = vsub.f32 1.0, %v3047_v30  ;;  %v1763_v44 = vmul.f32 %v3047_v30, %v3716_v49 }
 0x85b   :  { %v1759_v28 = vadd.f32 %v1758_v26, %v3467_v12 }
 0x85d   :  { %3048 = vtanh.f32 %v1759_v28 }
 0x867   :  { %v3049_v41 = vpop.eup %3048 }
 0x868   :  { %v1762_v32 = vmul.f32 %v3049_v41, %v1761_v38 }
 0x86a   :  { %v1764_v51 = vadd.f32 %v1763_v44, %v1762_v32 }
 0x86c   :  { %2432 = vmatmul.mubr.f32.vlgmr.msra.gmra.mrb[16].mxu0 %v1764_v51 }
 0x93f   :  { %v1854_v53 = vpop.f32.mrb[16].mxu0 }
 0x940   :  { %v1855_v59 = vadd.f32 %v1939_v55, %v1854_v53  ;;  %v2433_v1 = vpop.f32.mrb[17].mxu0 }
 0x942   :  { %1859 = vst.msk [vmem:[#allocation8] sm:$0x3] %vm1858_vm3, %v1855_v59 }
 0x943   :  { %3095 = shalt.err (!%p3092_p3)
}
 0x944   :  { %s3096_s17 = scalar_lea.hbm %s3805_s8, 32 }
 0x945   :  { %p3097_p4 = scmp.ne.s32.totalorder %s3805_s8, %s3096_s17  ;;  %p3100_p5 = scmp.lt.u32.totalorder %s3096_s17, %s3805_s8 }
 0x947   :  { %p3102_p6 = pnand %p3100_p5, %p3097_p4 }
 0x949   :  { %3105 = shalt.err (!%p3102_p6)
}
 0x94a   :  { %1869 = dma.vmem_to_hbm [thread:$0]  %s1867_s10, 32, %s3805_s8, [#allocation5]  }
 0x94b   :  { %3110 = dma.done.wait [#allocation5], 32  }
 0x94c   :  { %3111 = vsyncadd [#allocation5], 4294967264 }
 0x94d   :  { %1873 = vsyncpa [#allocation4], 1 }
 0x94e   :  { %1874 = vsyncpa [#allocation5], 1 }
 0x94f   :  { %1875 = vsyncpa [#allocation6], 1 }

</bundles_post_ra>
